<compile_context>
chip_gen: v5e
topology: v5e:2x2
jax: 0.10.0
libtpu: 0.0.40
codegen_flags: <defaults>
</compile_context>

<pallas_src>
import jax
import jax.numpy as jnp
from jax.experimental import pallas as pl
from jax.experimental.pallas import tpu as pltpu


# ----------------------------- Pallas kernel -------------------------------

def _fire_kernel(x_ref, halo_ref, wsq_ref, bsq_ref, wp_ref, bias_ref, out_ref):
    # x_ref    : (TPW, Cin)  bf16  non-overlapping row block (TPW = th*W pixels)
    # halo_ref : (2*W, Cin)  bf16  [row above block | row below block]
    # wsq_ref  : (Cin, Csq)  bf16 ; bsq_ref : (1, Csq) f32
    # wp_ref   : (3, K, Ce)  bf16  packed weights, K = 3*Csq + Cin
    #            rows [0:Csq]=left tap, [Csq:2Csq]=centre tap (+expand1x1 cols),
    #            [2Csq:3Csq]=right tap, [3Csq:K]=shortcut (centre slice only)
    # bias_ref : (1, Ce)     f32   merged expand1x1 / expand3x3(BN) / shortcut bias
    # out_ref  : (TPW, Ce)   bf16
    tpw, _ = x_ref.shape
    csq = wsq_ref.shape[1]
    w_img = halo_ref.shape[0] // 2          # image width W
    p2 = tpw + 2 * w_img                    # pixels incl. 1-row halo top+bottom
    i = pl.program_id(1)
    nb = pl.num_programs(1)

    # (th+2)-row working set: [top halo row | block rows | bottom halo row].
    xb = jnp.concatenate([halo_ref[:w_img], x_ref[...], halo_ref[w_img:]], axis=0)

    # squeeze 1x1 conv + ReLU (f32 accumulate / f32 elementwise).
    s = jnp.dot(xb, wsq_ref[...], preferred_element_type=jnp.float32)
    s = jnp.maximum(s + bsq_ref[...], 0.0)

    # In-kernel padding masks (pure function of the block index -> no HBM inputs).
    pix = jax.lax.broadcasted_iota(jnp.int32, (p2, csq), 0)    # flat pixel index
    if (w_img & (w_img - 1)) == 0:          # static: W is a power of two
        col = pix & (w_img - 1)
    else:                                   # TODO(synk): non-pow2 W uses vector rem
        col = pix % w_img
    vpad = ((pix < w_img) & (i == 0)) | ((pix >= w_img + tpw) & (i == nb - 1))
    s_c = jnp.where(vpad, 0.0, s)           # zero halo rows outside the image

    # +/-1 pixel-shifted copies (left / right neighbour).  The column masks zero
    # the horizontal wrap-around so the shifted dots implement zero padding.
    # (Shifts kept in f32 via concatenate -- proven lowering; pltpu.roll on the
    #  sublane axis + masks is an equivalent XLU-side alternative.)
    zrow = jnp.zeros((1, csq), jnp.float32)
    s_l = jnp.concatenate(
        [zrow, jnp.where(col == w_img - 1, 0.0, s_c)[:p2 - 1]], axis=0)
    s_r = jnp.concatenate(
        [jnp.where(col == 0, 0.0, s_c)[1:], zrow], axis=0)

    # Fused, lane-dense LHS: K = 3*Csq + Cin (= 128 in the test), so each of the
    # three dots below fully feeds the MXU contraction depth and the 3x3 conv,
    # expand1x1 and shortcut all accumulate inside the MXU.
    lhs = jnp.concatenate([s_l.astype(jnp.bfloat16),
                           s_c.astype(jnp.bfloat16),
                           s_r.astype(jnp.bfloat16),
                           xb], axis=-1)                      # (p2, K) bf16

    acc = jnp.dot(lhs[0:tpw], wp_ref[0], preferred_element_type=jnp.float32)
    acc = acc + jnp.dot(lhs[w_img:w_img + tpw], wp_ref[1],
                        preferred_element_type=jnp.float32)
    acc = acc + jnp.dot(lhs[2 * w_img:2 * w_img + tpw], wp_ref[2],
                        preferred_element_type=jnp.float32)

    out_ref[...] = (acc + bias_ref[...]).astype(out_ref.dtype)


# ------------------------------ Wrapper -------------------------------------

def _pick_tile_h(h, w, target_pixels=2048):
    """Largest divisor of h with tile_h*w <= target_pixels (>= 1).

    Keeps every block identical (no ragged last block) and bounds per-step VMEM
    by ~target_pixels regardless of image size.  Lower target_pixels for v7x /
    very wide channel counts if needed.  TODO(synk): a cdiv + masked last block
    would remove the divisor restriction entirely."""
    best = 1
    for th in range(1, h + 1):
        if h % th == 0 and th * w <= target_pixels:
            best = th
    return best


def fire_res_block(x_nchw, params, tile_h=None):
    """Fused FireResBlock forward (NCHW in / NCHW out)."""
    N, Cin, H, W = x_nchw.shape
    Csq = params["wsq"].shape[1]
    Ce1 = params["we1"].shape[1]
    Ce3 = params["be3"].shape[0]
    Ce = Ce1 + Ce3
    K = 3 * Csq + Cin

    th = tile_h if (tile_h is not None and H % tile_h == 0) else _pick_tile_h(H, W)
    nb = H // th
    TPW = th * W

    # ---- fold BN (inference form, eps=1e-5) in f32, pack weights, cast last ----
    eps = 1e-5
    scale1 = params["g1"] / jnp.sqrt(params["v1"] + eps)
    shift1 = params["b1"] - params["m1"] * scale1
    scale2 = params["g2"] / jnp.sqrt(params["v2"] + eps)
    shift2 = params["b2"] - params["m2"] * scale2
    we1f = params["we1"] * scale1[None, :]
    be1f = params["be1"] * scale1 + shift1
    w3f = params["w3_hwio"] * scale2[None, None, None, :]
    be3f = params["be3"] * scale2 + shift2

    # Packed (3, K, Ce) weight stack; LHS channel layout is [s_l | s_c | s_r | x].
    wp = jnp.zeros((3, K, Ce), jnp.float32)
    wp = wp.at[:, 0 * Csq:1 * Csq, Ce1:].set(w3f[:, 0])     # 3x3 taps, kx = 0
    wp = wp.at[:, 1 * Csq:2 * Csq, Ce1:].set(w3f[:, 1])     # 3x3 taps, kx = 1
    wp = wp.at[:, 2 * Csq:3 * Csq, Ce1:].set(w3f[:, 2])     # 3x3 taps, kx = 2
    wp = wp.at[1, 1 * Csq:2 * Csq, :Ce1].set(we1f)          # expand1x1 -> centre tap
    wp = wp.at[1, 3 * Csq:, :].set(params["wsc"])           # shortcut   -> centre row
    bias = (jnp.concatenate([be1f, be3f]) + params["bsc"]).reshape(1, Ce)

    wsq_b = params["wsq"].astype(jnp.bfloat16)
    wp_b = wp.astype(jnp.bfloat16)
    bsq = params["bsq"].reshape(1, Csq).astype(jnp.float32)

    # ---- layout: NCHW -> NHWC once (interface requirement), then free reshape ----
    x = jnp.transpose(x_nchw, (0, 2, 3, 1)).astype(jnp.bfloat16)   # (N, H, W, Cin)
    x_flat = x.reshape(N, H * W, Cin)                              # free (contiguous)

    # Tiny per-block halo side input: the one row above / below each block
    # (zero rows at the image border).  Only 2 rows per block leave HBM -- no
    # pad+stack rewrite of the whole activation.
    zrow = jnp.zeros((N, 1, W, Cin), jnp.bfloat16)
    if nb > 1:
        tops = jnp.concatenate([zrow, x[:, th - 1::th][:, :nb - 1]], axis=1)
        bots = jnp.concatenate([x[:, th::th][:, :nb - 1], zrow], axis=1)
    else:
        tops, bots = zrow, zrow
    halo = jnp.stack([tops, bots], axis=2).reshape(N, nb, 2 * W, Cin)

    out = pl.pallas_call(
        _fire_kernel,
        out_shape=jax.ShapeDtypeStruct((N, H * W, Ce), jnp.bfloat16),
        grid_spec=pltpu.PrefetchScalarGridSpec(
            num_scalar_prefetch=0,
            grid=(N, nb),
            in_specs=[
                pl.BlockSpec((None, TPW, Cin), lambda n, i: (n, i, 0)),
                pl.BlockSpec((None, None, 2 * W, Cin), lambda n, i: (n, i, 0, 0)),
                # Constant-index weight / bias operands.  (pipeline_mode=
                # pl.Buffered(1) would single-buffer them; skipped -- ~100 KiB
                # total here, only worth it when Csq/Ce grow on v7x's 64 MiB.
                # fp8 weight quantisation on v7x is a further option.)
                pl.BlockSpec((Cin, Csq), lambda n, i: (0, 0)),
                pl.BlockSpec((1, Csq), lambda n, i: (0, 0)),
                pl.BlockSpec((3, K, Ce), lambda n, i: (0, 0, 0)),
                pl.BlockSpec((1, Ce), lambda n, i: (0, 0)),
            ],
            out_specs=pl.BlockSpec((None, TPW, Ce), lambda n, i: (n, i, 0)),
        ),
        compiler_params=pltpu.CompilerParams(
            dimension_semantics=("parallel", "parallel"),
            vmem_limit_bytes=48 * 1024 * 1024),
    )(x_flat, halo, wsq_b, bsq, wp_b, bias)

    out = out.reshape(N, H, W, Ce)                       # free reshape
    # NHWC -> NCHW to honour the PyTorch interface; cast back to the input dtype.
    return jnp.transpose(out, (0, 3, 1, 2)).astype(x_nchw.dtype)


# --------------------------- Parameter setup --------------------------------

def init_params(key, cin, csq, ce1, ce3):
    ks = jax.random.split(key, 12)

    def u(k, shape, scale):
        w = jax.random.uniform(k, shape, jnp.float32, -scale, scale)
        # keep params bf16-representable so the bf16 kernel operands carry the
        # exact same values as the f32 reference
        return w.astype(jnp.bfloat16).astype(jnp.float32)

    wsq = u(ks[0], (cin, csq), 1.0 / cin ** 0.5)
    bsq = u(ks[1], (csq,), 1.0 / cin ** 0.5)
    we1 = u(ks[2], (csq, ce1), 1.0 / csq ** 0.5)
    be1 = u(ks[3], (ce1,), 1.0 / csq ** 0.5)
    w3 = u(ks[4], (3, 3, csq, ce3), 1.0 / (9 * csq) ** 0.5)
    be3 = u(ks[5], (ce3,), 1.0 / (9 * csq) ** 0.5)
    ce = ce1 + ce3
    wsc = u(ks[6], (cin, ce), 1.0 / cin ** 0.5)
    bsc = u(ks[7], (ce,), 1.0 / cin ** 0.5)

    g1 = 1.0 + 0.1 * u(ks[8], (ce1,), 1.0)
    b1 = 0.1 * u(ks[9], (ce1,), 1.0)
    m1 = 0.05 * jnp.arange(ce1, dtype=jnp.float32)
    v1 = 1.0 + 0.02 * jnp.arange(ce1, dtype=jnp.float32)
    g2 = 1.0 + 0.1 * u(ks[10], (ce3,), 1.0)
    b2 = 0.1 * u(ks[11], (ce3,), 1.0)
    m2 = 0.03 * jnp.arange(ce3, dtype=jnp.float32)
    v2 = 1.0 + 0.01 * jnp.arange(ce3, dtype=jnp.float32)

    return dict(wsq=wsq, bsq=bsq, we1=we1, be1=be1, w3_hwio=w3, be3=be3,
                wsc=wsc, bsc=bsc, g1=g1, b1=b1, m1=m1, v1=v1,
                g2=g2, b2=b2, m2=m2, v2=v2)


# -------------------------- Pure-JAX reference ------------------------------

def reference(x_nchw, p, eps=1e-5):
    x = jnp.transpose(x_nchw, (0, 2, 3, 1))
    sc = jnp.einsum("nhwc,co->nhwo", x, p["wsc"]) + p["bsc"]
    s = jax.nn.relu(jnp.einsum("nhwc,co->nhwo", x, p["wsq"]) + p["bsq"])
    scale1 = p["g1"] / jnp.sqrt(p["v1"] + eps)
    shift1 = p["b1"] - p["m1"] * scale1
    scale2 = p["g2"] / jnp.sqrt(p["v2"] + eps)
    shift2 = p["b2"] - p["m2"] * scale2
    e1 = (jnp.einsum("nhwc,co->nhwo", s, p["we1"]) + p["be1"]) * scale1 + shift1
    e3 = jax.lax.conv_general_dilated(
        s, p["w3_hwio"], window_strides=(1, 1), padding="SAME",
        dimension_numbers=("NHWC", "HWIO", "NHWC")) + p["be3"]
    e3 = e3 * scale2 + shift2
    out = jnp.concatenate([e1, e3], axis=-1) + sc
    return jnp.transpose(out, (0, 3, 1, 2))


# ------------------------------- Main ----------------------------------------

if __name__ == "__main__":
    key = jax.random.PRNGKey(0)
    kx_, kp = jax.random.split(key)

    N, Cin, H, W = 2, 32, 16, 16
    Csq, Ce1, Ce3 = 32, 64, 64        # K = 3*32+32 = 128, Ce = 128 -> lane dense

    x = jax.random.normal(kx_, (N, Cin, H, W), jnp.float32)
    x = x.astype(jnp.bfloat16).astype(jnp.float32)   # bf16-representable input

    params = init_params(kp, Cin, Csq, Ce1, Ce3)

    fire = jax.jit(fire_res_block)
    out = jax.block_until_ready(fire(x, params))
    assert out.shape == (N, Ce1 + Ce3, H, W), out.shape

    ref = reference(x, params)
    max_err = float(jnp.max(jnp.abs(out - ref)))
    assert max_err < 3e-2, f"mismatch vs reference: {max_err}"

    print("KERNEL_OK")
</pallas_src>

<mosaic_0001>
module attributes {stable_mosaic.version = 11 : i64} {
  func.func @_fire_kernel(%arg0: i32, %arg1: i32, %arg2: memref<1x256x32xbf16, #tpu.memory_space<vmem>>, %arg3: memref<1x1x32x32xbf16, #tpu.memory_space<vmem>>, %arg4: memref<32x32xbf16, #tpu.memory_space<vmem>>, %arg5: memref<1x32xf32, #tpu.memory_space<vmem>>, %arg6: memref<3x128x128xbf16, #tpu.memory_space<vmem>>, %arg7: memref<1x128xf32, #tpu.memory_space<vmem>>, %arg8: memref<1x256x128xbf16, #tpu.memory_space<vmem>>) attributes {dimension_semantics = [#tpu.dimension_semantics<parallel>, #tpu.dimension_semantics<parallel>], iteration_bounds = array<i64: 2, 1>, scalar_prefetch = 0 : i64, scratch_operands = 0 : i64, tpu.core_type = #tpu.core_type<tc>, window_params = [{transform_indices = @transform_0, window_bounds = array<i64: 1, 256, 32>}, {transform_indices = @transform_1, window_bounds = array<i64: 1, 1, 32, 32>}, {pipeline_mode = #tpu.pipeline_mode<synchronous>, transform_indices = @transform_2, window_bounds = array<i64: 32, 32>}, {pipeline_mode = #tpu.pipeline_mode<synchronous>, transform_indices = @transform_3, window_bounds = array<i64: 1, 32>}, {pipeline_mode = #tpu.pipeline_mode<synchronous>, transform_indices = @transform_4, window_bounds = array<i64: 3, 128, 128>}, {pipeline_mode = #tpu.pipeline_mode<synchronous>, transform_indices = @transform_5, window_bounds = array<i64: 1, 128>}, {transform_indices = @transform_6, window_bounds = array<i64: 1, 256, 128>}]} {
    %c0 = arith.constant 0 : index
    %c0_0 = arith.constant 0 : index
    %c0_1 = arith.constant 0 : index
    %c0_2 = arith.constant 0 : index
    %0 = vector.load %arg3[%c0, %c0_0, %c0_1, %c0_2] : memref<1x1x32x32xbf16, #tpu.memory_space<vmem>>, vector<1x1x16x32xbf16>
    %1 = vector.shape_cast %0 : vector<1x1x16x32xbf16> to vector<16x32xbf16>
    %c0_3 = arith.constant 0 : index
    %c0_4 = arith.constant 0 : index
    %c0_5 = arith.constant 0 : index
    %2 = vector.load %arg2[%c0_3, %c0_4, %c0_5] : memref<1x256x32xbf16, #tpu.memory_space<vmem>>, vector<1x256x32xbf16>
    %3 = vector.shape_cast %2 : vector<1x256x32xbf16> to vector<256x32xbf16>
    %c0_6 = arith.constant 0 : index
    %c0_7 = arith.constant 0 : index
    %c16 = arith.constant 16 : index
    %c0_8 = arith.constant 0 : index
    %4 = vector.load %arg3[%c0_6, %c0_7, %c16, %c0_8] : memref<1x1x32x32xbf16, #tpu.memory_space<vmem>>, vector<1x1x16x32xbf16>
    %5 = vector.shape_cast %4 : vector<1x1x16x32xbf16> to vector<16x32xbf16>
    %6 = tpu.concatenate %1, %3, %5 in 0 : vector<16x32xbf16>, vector<256x32xbf16>, vector<16x32xbf16> -> vector<288x32xbf16>
    %c0_9 = arith.constant 0 : index
    %c0_10 = arith.constant 0 : index
    %7 = vector.load %arg4[%c0_9, %c0_10] : memref<32x32xbf16, #tpu.memory_space<vmem>>, vector<32x32xbf16>
    %cst = arith.constant dense<0.000000e+00> : vector<288x32xf32>
    %8 = tpu.matmul %6, %7, %cst {dimension_numbers = #tpu.dot_dimension_numbers<[1], [0], [0], [1], [0, 0, 1, 1], [], []>} : vector<288x32xbf16>, vector<32x32xbf16>, vector<288x32xf32> -> vector<288x32xf32>
    %c0_11 = arith.constant 0 : index
    %c0_12 = arith.constant 0 : index
    %9 = vector.load %arg5[%c0_11, %c0_12] : memref<1x32xf32, #tpu.memory_space<vmem>>, vector<1x32xf32>
    %10 = vector.broadcast %9 : vector<1x32xf32> to vector<288x32xf32>
    %11 = arith.addf %8, %10 : vector<288x32xf32>
    %cst_13 = arith.constant 0.000000e+00 : f32
    %12 = vector.broadcast %cst_13 : f32 to vector<288x32xf32>
    %13 = arith.maximumf %11, %12 : vector<288x32xf32>
    %14 = tpu.iota {dimensions = array<i32: 0>} : vector<288x32xi32>
    %c15_i32 = arith.constant 15 : i32
    %15 = vector.broadcast %c15_i32 : i32 to vector<288x32xi32>
    %16 = arith.andi %14, %15 : vector<288x32xi32>
    %c16_i32 = arith.constant 16 : i32
    %17 = vector.broadcast %c16_i32 : i32 to vector<288x32xi32>
    %18 = arith.cmpi slt, %14, %17 : vector<288x32xi32>
    %c0_i32 = arith.constant 0 : i32
    %19 = arith.cmpi eq, %arg1, %c0_i32 : i32
    %20 = vector.broadcast %19 : i1 to vector<288x32xi1>
    %21 = arith.andi %18, %20 : vector<288x32xi1>
    %c272_i32 = arith.constant 272 : i32
    %22 = vector.broadcast %c272_i32 : i32 to vector<288x32xi32>
    %23 = arith.cmpi sge, %14, %22 : vector<288x32xi32>
    %c0_i32_14 = arith.constant 0 : i32
    %24 = arith.cmpi eq, %arg1, %c0_i32_14 : i32
    %25 = vector.broadcast %24 : i1 to vector<288x32xi1>
    %26 = arith.andi %23, %25 : vector<288x32xi1>
    %27 = arith.ori %21, %26 : vector<288x32xi1>
    %cst_15 = arith.constant 0.000000e+00 : f32
    %28 = vector.broadcast %cst_15 : f32 to vector<288x32xf32>
    %29 = arith.select %27, %28, %13 : vector<288x32xi1>, vector<288x32xf32>
    %cst_16 = arith.constant 0.000000e+00 : f32
    %30 = vector.broadcast %cst_16 : f32 to vector<1x32xf32>
    %c15_i32_17 = arith.constant 15 : i32
    %31 = vector.broadcast %c15_i32_17 : i32 to vector<288x32xi32>
    %32 = arith.cmpi eq, %16, %31 : vector<288x32xi32>
    %cst_18 = arith.constant 0.000000e+00 : f32
    %33 = vector.broadcast %cst_18 : f32 to vector<288x32xf32>
    %34 = arith.select %32, %33, %29 : vector<288x32xi1>, vector<288x32xf32>
    %35 = vector.extract_strided_slice %34 {offsets = [0, 0], sizes = [287, 32], strides = [1, 1]} : vector<288x32xf32> to vector<287x32xf32>
    %36 = tpu.concatenate %30, %35 in 0 : vector<1x32xf32>, vector<287x32xf32> -> vector<288x32xf32>
    %c0_i32_19 = arith.constant 0 : i32
    %37 = vector.broadcast %c0_i32_19 : i32 to vector<288x32xi32>
    %38 = arith.cmpi eq, %16, %37 : vector<288x32xi32>
    %cst_20 = arith.constant 0.000000e+00 : f32
    %39 = vector.broadcast %cst_20 : f32 to vector<288x32xf32>
    %40 = arith.select %38, %39, %29 : vector<288x32xi1>, vector<288x32xf32>
    %41 = vector.extract_strided_slice %40 {offsets = [1, 0], sizes = [287, 32], strides = [1, 1]} : vector<288x32xf32> to vector<287x32xf32>
    %42 = tpu.concatenate %41, %30 in 0 : vector<287x32xf32>, vector<1x32xf32> -> vector<288x32xf32>
    %43 = arith.truncf %36 : vector<288x32xf32> to vector<288x32xbf16>
    %44 = arith.truncf %29 : vector<288x32xf32> to vector<288x32xbf16>
    %45 = arith.truncf %42 : vector<288x32xf32> to vector<288x32xbf16>
    %46 = tpu.concatenate %43, %44, %45, %6 in 1 : vector<288x32xbf16>, vector<288x32xbf16>, vector<288x32xbf16>, vector<288x32xbf16> -> vector<288x128xbf16>
    %47 = vector.extract_strided_slice %46 {offsets = [0, 0], sizes = [256, 128], strides = [1, 1]} : vector<288x128xbf16> to vector<256x128xbf16>
    %c0_21 = arith.constant 0 : index
    %c0_22 = arith.constant 0 : index
    %c0_23 = arith.constant 0 : index
    %48 = vector.load %arg6[%c0_21, %c0_22, %c0_23] : memref<3x128x128xbf16, #tpu.memory_space<vmem>>, vector<1x128x128xbf16>
    %49 = vector.shape_cast %48 : vector<1x128x128xbf16> to vector<128x128xbf16>
    %cst_24 = arith.constant dense<0.000000e+00> : vector<256x128xf32>
    %50 = tpu.matmul %47, %49, %cst_24 {dimension_numbers = #tpu.dot_dimension_numbers<[1], [0], [0], [1], [0, 0, 1, 1], [], []>} : vector<256x128xbf16>, vector<128x128xbf16>, vector<256x128xf32> -> vector<256x128xf32>
    %51 = vector.extract_strided_slice %46 {offsets = [16, 0], sizes = [256, 128], strides = [1, 1]} : vector<288x128xbf16> to vector<256x128xbf16>
    %c1 = arith.constant 1 : index
    %c0_25 = arith.constant 0 : index
    %c0_26 = arith.constant 0 : index
    %52 = vector.load %arg6[%c1, %c0_25, %c0_26] : memref<3x128x128xbf16, #tpu.memory_space<vmem>>, vector<1x128x128xbf16>
    %53 = vector.shape_cast %52 : vector<1x128x128xbf16> to vector<128x128xbf16>
    %cst_27 = arith.constant dense<0.000000e+00> : vector<256x128xf32>
    %54 = tpu.matmul %51, %53, %cst_27 {dimension_numbers = #tpu.dot_dimension_numbers<[1], [0], [0], [1], [0, 0, 1, 1], [], []>} : vector<256x128xbf16>, vector<128x128xbf16>, vector<256x128xf32> -> vector<256x128xf32>
    %55 = arith.addf %50, %54 : vector<256x128xf32>
    %56 = vector.extract_strided_slice %46 {offsets = [32, 0], sizes = [256, 128], strides = [1, 1]} : vector<288x128xbf16> to vector<256x128xbf16>
    %c2 = arith.constant 2 : index
    %c0_28 = arith.constant 0 : index
    %c0_29 = arith.constant 0 : index
    %57 = vector.load %arg6[%c2, %c0_28, %c0_29] : memref<3x128x128xbf16, #tpu.memory_space<vmem>>, vector<1x128x128xbf16>
    %58 = vector.shape_cast %57 : vector<1x128x128xbf16> to vector<128x128xbf16>
    %cst_30 = arith.constant dense<0.000000e+00> : vector<256x128xf32>
    %59 = tpu.matmul %56, %58, %cst_30 {dimension_numbers = #tpu.dot_dimension_numbers<[1], [0], [0], [1], [0, 0, 1, 1], [], []>} : vector<256x128xbf16>, vector<128x128xbf16>, vector<256x128xf32> -> vector<256x128xf32>
    %60 = arith.addf %55, %59 : vector<256x128xf32>
    %c0_31 = arith.constant 0 : index
    %c0_32 = arith.constant 0 : index
    %61 = vector.load %arg7[%c0_31, %c0_32] : memref<1x128xf32, #tpu.memory_space<vmem>>, vector<1x128xf32>
    %62 = vector.broadcast %61 : vector<1x128xf32> to vector<256x128xf32>
    %63 = arith.addf %60, %62 : vector<256x128xf32>
    %64 = arith.truncf %63 : vector<256x128xf32> to vector<256x128xbf16>
    %c0_33 = arith.constant 0 : index
    %c0_34 = arith.constant 0 : index
    %c0_35 = arith.constant 0 : index
    %65 = vector.load %arg8[%c0_33, %c0_34, %c0_35] : memref<1x256x128xbf16, #tpu.memory_space<vmem>>, vector<1x256x128xbf16>
    %66 = vector.shape_cast %65 : vector<1x256x128xbf16> to vector<256x128xbf16>
    %67 = vector.shape_cast %64 : vector<256x128xbf16> to vector<1x256x128xbf16>
    tpu.vector_store %arg8[%c0_33, %c0_34, %c0_35], %67 {strides = array<i32>} : memref<1x256x128xbf16, #tpu.memory_space<vmem>>, vector<1x256x128xbf16>,
    return
  }
  func.func @transform_0(%arg0: i32, %arg1: i32) -> (i32, i32, i32) {
    %c0_i32 = arith.constant 0 : i32
    %c0_i32_0 = arith.constant 0 : i32
    return %arg0, %arg1, %c0_i32 : i32, i32, i32
  }
  func.func @transform_1(%arg0: i32, %arg1: i32) -> (i32, i32, i32, i32) {
    %c0_i32 = arith.constant 0 : i32
    %c0_i32_0 = arith.constant 0 : i32
    %c0_i32_1 = arith.constant 0 : i32
    return %arg0, %arg1, %c0_i32, %c0_i32_0 : i32, i32, i32, i32
  }
  func.func @transform_2(%arg0: i32, %arg1: i32) -> (i32, i32) {
    %c0_i32 = arith.constant 0 : i32
    %c0_i32_0 = arith.constant 0 : i32
    %c0_i32_1 = arith.constant 0 : i32
    return %c0_i32, %c0_i32_0 : i32, i32
  }
  func.func @transform_3(%arg0: i32, %arg1: i32) -> (i32, i32) {
    %c0_i32 = arith.constant 0 : i32
    %c0_i32_0 = arith.constant 0 : i32
    %c0_i32_1 = arith.constant 0 : i32
    return %c0_i32, %c0_i32_0 : i32, i32
  }
  func.func @transform_4(%arg0: i32, %arg1: i32) -> (i32, i32, i32) {
    %c0_i32 = arith.constant 0 : i32
    %c0_i32_0 = arith.constant 0 : i32
    %c0_i32_1 = arith.constant 0 : i32
    %c0_i32_2 = arith.constant 0 : i32
    return %c0_i32, %c0_i32_0, %c0_i32_1 : i32, i32, i32
  }
  func.func @transform_5(%arg0: i32, %arg1: i32) -> (i32, i32) {
    %c0_i32 = arith.constant 0 : i32
    %c0_i32_0 = arith.constant 0 : i32
    %c0_i32_1 = arith.constant 0 : i32
    return %c0_i32, %c0_i32_0 : i32, i32
  }
  func.func @transform_6(%arg0: i32, %arg1: i32) -> (i32, i32, i32) {
    %c0_i32 = arith.constant 0 : i32
    %c0_i32_0 = arith.constant 0 : i32
    return %arg0, %arg1, %c0_i32 : i32, i32, i32
  }
}

</mosaic_0001>

<bundles_post_ra>
// kernel: fire_res_block.1
= control target key start
LH: loop header
LB: loop body
LE: loop exit
PB: predicated region body
PF: predicated region fallthrough
CT: control target
= control target key end

     0   :  { %s3199_s21 = smov 0   ;;  %s3201_s22 = smov 0   ;;  %s3917_s0 = inlined_call_operand.vmem [shape: bf16[2,256,32], index: 0, kind: input, shape index: {}]   ;;  %s3918_s1 = inlined_call_operand.vmem [shape: bf16[2,1,32,32], index: 1, kind: input, shape index: {}]   ;;  %s3919_s2 = inlined_call_operand.vmem [shape: bf16[32,32], index: 2, kind: input, shape index: {}]   ;;  %s3920_s3 = inlined_call_operand.vmem [shape: f32[1,32], index: 3, kind: input, shape index: {}]   ;;  %s3921_s4 = inlined_call_operand.vmem [shape: bf16[3,128,128], index: 4, kind: input, shape index: {}]   ;;  %s3922_s5 = inlined_call_operand.vmem [shape: f32[1,128], index: 5, kind: input, shape index: {}]   ;;  %s3923_s6 = inlined_call_operand.vmem [shape: bf16[2,256,128], index: 6, kind: output, shape index: {}]  }
   0x1   :  { %s3203_s23 = smov 0  }
   0x2 LB: > { %s28_s24 = sadd.s32 1, %s3153_s22  ;;  %p2726_p0 = scmp.ge.s32.totalorder %s3157_s23, 1  ;;  %s3157_s23 = sphi %s3203_s23, %s16_s23   ;;  %s3153_s22 = sphi %s3201_s22, %s3927_s22   ;;  %s3149_s21 = sphi %s3199_s21, %s3926_s21  }
   0x3   : > { %p30_p1 = scmp.ge.s32.totalorder %s28_s24, 2  ;;  %p249_p2 = scmp.lt.s32.totalorder %s3157_s23, 3 }
   0x5   : > { %s3929_s24 = smov (%p30_p1, %s28_s24), 0  ;;  %p250_p3 = pnand %p2726_p0, %p249_p2 }
   0x6   : > { %p297_p4 = scmp.lt.s32.totalorder (!%p250_p3), %s3149_s21, 1  ;;  %s3159_s13 = smov (!%p250_p3), 96  }
   0x7   : > { %253 = sbr.rel (%p250_p3) target bundleno = 712 (0x2c8), region = 44  ;;  %s3161_s14 = smov (!%p250_p3), 32  }
   0x8   : > { %s3163_s17 = smov (!%p250_p3), 64  }
   0xc   : > { %v2983_v0 = vld [vmem:[%s3919_s2 + $0x8] sm:$0xff]  ;;  %v2982_v1 = vld [vmem:[%s3919_s2] sm:$0xff]  ;;  %s3931_s21 = smov (!%p297_p4, %s3149_s21), 1  ;;  %vm472_vm0 = vcmask 261120   ;;  %v3160_v10 = vmov 0.0|0.0   ;;  %v662_v15 = vlaneseq  ;;  %v3162_v24 = vmov 0.0  }
   0xd   : > { %533 = vmatpush.bf16.msra.mxu0 %v2983_v0  ;;  %s2962_s29 = sshll.u32 %s3931_s21, 4  ;;  %s2961_s9 = sshll.u32 %s3931_s21, 7  ;;  %v1623_v11 = vunpack.c.l.b16 %v3160_v10  ;;  %v3290_v19 = vld [vmem:[%s3920_s3] ss:$0 sm:$0xff]  ;;  %v3296_v25 = vrot.slane %v3162_v24, 1  ;;  %vm1280_vm2 = vcmask 1046528  }
   0xe   : > { %s3229_s8 = scalar_lea.vmem %s3918_s1, %s2962_s29  ;;  %s3239_s12 = scalar_lea.vmem %s3917_s0, %s2961_s9  ;;  %v3284_v16 = vshrl.u32 %v662_v15, 7  ;;  %v3305_v34 = vrot.slane %v3162_v24, 7  ;;  %vm1063_vm3 = vcmask 1040384  }
   0xf   : > { %v2964_v2 = vld [vmem:[%s3229_s8] sm:$0xff]  ;;  %v2966_v4 = vld [vmem:[%s3239_s12 + $0x8] sm:$0xff]  ;;  %v3251_v5 = vld [vmem:[%s3239_s12 + $0x10] sm:$0xff]  ;;  %v3275_v12 = vpack.c.b16 %v1623_v11, %v1623_v11  ;;  %v1461_v29 = vpack.c.bf16 %v3296_v25, %v3296_v25  ;;  %s3817_s29 = scalar_lea.vmem %s3923_s6, %s2961_s9 }
  0x10   : > { %v3242_v3 = vld [vmem:[%s3239_s12] sm:$0xff]  ;;  %1839 = vrot.lane.b32.xlu1 %v2964_v2, %s3159_s13  ;;  %1843 = vrot.lane.b32.xlu2 %v2966_v4, %s3159_s13  ;;  %v3256_v6 = vld [vmem:[%s3239_s12 + $0x18] sm:$0xff]  ;;  %v665_v18 = vadd.s32 16, %v3284_v16  ;;  %v666_v26 = vadd.s32 24, %v3284_v16  ;;  %v667_v41 = vadd.s32 32, %v3284_v16  ;;  %v668_v56 = vadd.s32 40, %v3284_v16 }
  0x11   : > { %534 = vmatpush.bf16.msra.mxu0 %v2982_v1  ;;  %v3261_v7 = vld [vmem:[%s3239_s12 + $0x20] sm:$0xff]  ;;  %v3266_v8 = vld [vmem:[%s3239_s12 + $0x28] sm:$0xff]  ;;  %v3271_v9 = vld [vmem:[%s3239_s12 + $0x30] sm:$0xff]  ;;  %1677 = vrot.lane.b32.xlu0 %v3275_v12, %s3161_s14  ;;  %v3311_v38 = vunpack.c.l.b16 %v1461_v29 }
  0x12   : > { %v3280_v13 = vld [vmem:[%s3239_s12 + $0x38] sm:$0xff]  ;;  %v701_v20 = vand.u32 15, %v665_v18  ;;  %v3293_v21 = vld [vmem:[%s3239_s12 + $0x40] sm:$0xff]  ;;  %v702_v31 = vand.u32 15, %v666_v26  ;;  %v3319_v48 = vld [vmem:[%s3239_s12 + $0x48] sm:$0xff]  ;;  %v703_v51 = vand.u32 15, %v667_v41 }
  0x13   : > { %v704_v0 = vand.u32 15, %v668_v56 }
  0x14   : > { %2813 = vmatmul.msk.bf16.vlgmr.msra.gmra.mxu0 %vm472_vm0, %v2964_v2  ;;  %vm1174_vm1 = vcmp.eq.s32.totalorder %v701_v20, 0  ;;  %vm958_vm4 = vcmp.eq.s32.totalorder %v702_v31, 15  ;;  %vm1176_vm5 = vcmp.eq.s32.totalorder %v703_v51, 0 }
  0x15   : > { %vm960_vm6 = vcmp.eq.s32.totalorder %v704_v0, 15 }
  0x24   : > { %2814 = vmatmul.msk.bf16.gmra.mxu0 %vm472_vm0, %v3242_v3 }
  0x34   : > { %2815 = vmatmul.msk.bf16.gmra.mxu0 %vm472_vm0, %v2966_v4 }
  0x44   : > { %2816 = vmatmul.msk.bf16.gmra.mxu0 %vm472_vm0, %v3251_v5 }
  0x54   : > { %2817 = vmatmul.msk.bf16.gmra.mxu0 %vm472_vm0, %v3256_v6 }
  0x64   : > { %2818 = vmatmul.msk.bf16.gmra.mxu0 %vm472_vm0, %v3261_v7 }
  0x74   : > { %2819 = vmatmul.msk.bf16.gmra.mxu0 %vm472_vm0, %v3266_v8 }
  0x84   : > { %2820 = vmatmul.msk.bf16.gmra.mxu0 %vm472_vm0, %v3271_v9 }
  0x91   : > { %v536_v14 = vpop.f32.mrf.mxu0 }
  0x92   : > { %v669_v14 = vadd.s32 48, %v3284_v16 }
  0x94   : > { %2821 = vmatmul.msk.bf16.gmra.mxu0 %vm472_vm0, %v3280_v13  ;;  %v705_v24 = vand.u32 15, %v669_v14 }
  0x96   : > { %vm1178_vm7 = vcmp.eq.s32.totalorder %v705_v24, 0 }
  0x99   : > { %v538_v17 = vpop.f32.mrf.mxu0 }
  0xa1   : > { %v541_v22 = vpop.f32.mrf.mxu0 }
  0xa2   : > { %v542_v23 = vadd.f32 %v3290_v19, %v541_v22 }
  0xa4   : > { %v628_v27 = vmax.f32 %v542_v23, 0.0  ;;  %2822 = vmatmul.msk.bf16.gmra.mxu0 %vm472_vm0, %v3293_v21 }
  0xa6   : > { %v1210_v28 = vsel %vm1174_vm1, 0.0, %v628_v27  ;;  %v1067_v32 = vrot.slane %v628_v27, 7  ;;  %v1427_v47 = vpack.c.bf16 %v628_v27, %v628_v27  ;;  %v3338_v27 = vld [vmem:[%s3239_s12 + $0x50] sm:$0xff] }
  0xa7   : > { %v3303_v30 = vrot.slane %v1210_v28, 1 }
  0xa8   : > { %v1068_v42 = vsel %vm1063_vm3, %v3305_v34, %v1067_v32  ;;  %v1625_v58 = vunpack.c.l.b16 %v1427_v47 }
  0xa9   : > { %v543_v33 = vpop.f32.mrf.mxu0  ;;  %v1285_v35 = vsel %vm1280_vm2, %v3296_v25, %v3303_v30  ;;  %v1391_v49 = vpack.c.bf16 %v1068_v42, %v1068_v42  ;;  %v670_v42 = vadd.s32 56, %v3284_v16 }
  0xaa   : > { %v544_v36 = vadd.f32 %v3290_v19, %v543_v33  ;;  %v1462_v37 = vpack.c.bf16 %v1285_v35, %v1285_v35 }
  0xab   : > { %v3326_v59 = vunpack.c.l.b16 %v1391_v49 }
  0xac   : > { %v629_v39 = vmax.f32 %v544_v36, 0.0  ;;  %v1750_v40 = vunpack.c.l.b16 %v1462_v37 }
  0xae   : > { %v994_v43 = vsel %vm958_vm4, 0.0, %v629_v39  ;;  %v1785_v44 = vpack.c.b16 %v1750_v40, %v3311_v38  ;;  %v1428_v45 = vpack.c.bf16 %v629_v39, %v629_v39  ;;  %v1286_v18 = vrot.slane %v629_v39, 1 }
  0xaf   : > { %v1069_v46 = vrot.slane %v994_v43, 7 }
  0xb0   : > { %1803 = vrot.lane.b32.xlu0 %v1785_v44, %s3163_s17  ;;  %v1626_v54 = vunpack.c.l.b16 %v1428_v45  ;;  %v1287_v35 = vsel %vm1280_vm2, %v3303_v30, %v1286_v18 }
  0xb1   : > { %v546_v50 = vpop.f32.mrf.mxu0  ;;  %v1070_v52 = vsel %vm1063_vm3, %v1067_v32, %v1069_v46  ;;  %v1463_v44 = vpack.c.bf16 %v1287_v35, %v1287_v35 }
  0xb2   : > { %v547_v53 = vadd.f32 %v3290_v19, %v546_v50  ;;  %v1392_v55 = vpack.c.bf16 %v1070_v52, %v1070_v52  ;;  %v1660_v62 = vpack.c.b16 %v1626_v54, %v1625_v58 }
  0xb3   : > { %v1751_v54 = vunpack.c.l.b16 %v1463_v44 }
  0xb4   : > { %v630_v57 = vmax.f32 %v547_v53, 0.0  ;;  %2823 = vmatmul.msk.bf16.gmra.mxu0 %vm472_vm0, %v3319_v48  ;;  %v3328_v60 = vunpack.c.l.b16 %v1392_v55  ;;  %v706_v53 = vand.u32 15, %v670_v42 }
  0xb6   : > { %v1071_v61 = vrot.slane %v630_v57, 7  ;;  %v1570_v63 = vpack.c.b16 %v3328_v60, %v3326_v59  ;;  %v1212_v1 = vsel %vm1176_vm5, 0.0, %v630_v57  ;;  %v1429_v15 = vpack.c.bf16 %v630_v57, %v630_v57 }
  0xb7   : > { %v1288_v11 = vrot.slane %v1212_v1, 1  ;;  %vm962_vm8 = vcmp.eq.s32.totalorder %v706_v53, 15  ;;  %v671_v1 = vadd.s32 64, %v3284_v16 }
  0xb8   : > { %1679 = vrot.lane.b32.xlu0 %v1660_v62, %s3161_s14  ;;  %v1072_v2 = vsel %vm1063_vm3, %v1069_v46, %v1071_v61  ;;  %v1627_v28 = vunpack.c.l.b16 %v1429_v15 }
  0xb9   : > { %v548_v4 = vpop.f32.mrf.mxu0  ;;  %v1289_v26 = vsel %vm1280_vm2, %v1286_v18, %v1288_v11  ;;  %v1393_v31 = vpack.c.bf16 %v1072_v2, %v1072_v2 }
  0xba   : > { %v549_v10 = vadd.f32 %v3290_v19, %v548_v4  ;;  %v1464_v40 = vpack.c.bf16 %v1289_v26, %v1289_v26 }
  0xbb   : > { %v3348_v45 = vunpack.c.l.b16 %v1393_v31 }
  0xbc   : > { %v631_v17 = vmax.f32 %v549_v10, 0.0  ;;  %v1752_v50 = vunpack.c.l.b16 %v1464_v40 }
  0xbe   : > { %v996_v20 = vsel %vm960_vm6, 0.0, %v631_v17  ;;  %v1430_v22 = vpack.c.bf16 %v631_v17, %v631_v17  ;;  %v1290_v32 = vrot.slane %v631_v17, 1  ;;  %v1786_v62 = vpack.c.b16 %v1752_v50, %v1751_v54 }
  0xbf   : > { %v1073_v23 = vrot.slane %v996_v20, 7  ;;  %v707_v20 = vand.u32 15, %v671_v1  ;;  %vm1929_vm6 = vcmask 523264  }
  0xc0   : > { %v1628_v29 = vunpack.c.l.b16 %v1430_v22  ;;  %v1291_v46 = vsel %vm1280_vm2, %v1288_v11, %v1290_v32  ;;  %v3362_v22 = vld [vmem:[%s3239_s12 + $0x58] sm:$0xff] }
  0xc1   : > { %v551_v33 = vpop.f32.mrf.mxu0  ;;  %v1074_v36 = vsel %vm1063_vm3, %v1071_v61, %v1073_v23  ;;  %v1465_v55 = vpack.c.bf16 %v1291_v46, %v1291_v46  ;;  %vm1180_vm9 = vcmp.eq.s32.totalorder %v707_v20, 0 }
  0xc2   : > { %v552_v37 = vadd.f32 %v3290_v19, %v551_v33  ;;  %v1661_v39 = vpack.c.b16 %v1628_v29, %v1627_v28  ;;  %v1394_v41 = vpack.c.bf16 %v1074_v36, %v1074_v36  ;;  %v672_v36 = vadd.s32 72, %v3284_v16 }
  0xc3   : > { %v1753_v10 = vunpack.c.l.b16 %v1465_v55 }
  0xc4   : > { %v632_v43 = vmax.f32 %v552_v37, 0.0  ;;  %2824 = vmatmul.msk.bf16.gmra.mxu0 %vm472_vm0, %v3338_v27  ;;  %1681 = vrot.lane.b32.xlu1 %v1661_v39, %s3161_s14  ;;  %v3350_v30 = vunpack.c.l.b16 %v1394_v41 }
  0xc6   : > { %v1075_v47 = vrot.slane %v632_v43, 7  ;;  %v1214_v49 = vsel %vm1178_vm7, 0.0, %v632_v43  ;;  %v1571_v51 = vpack.c.b16 %v3350_v30, %v3348_v45  ;;  %v1431_v2 = vpack.c.bf16 %v632_v43, %v632_v43 }
  0xc7   : > { %v1292_v52 = vrot.slane %v1214_v49, 1  ;;  %vm1966_vm7 = vcmask 785408  }
  0xc8   : > { %v1076_v56 = vsel %vm1063_vm3, %v1073_v23, %v1075_v47  ;;  %v1629_v23 = vunpack.c.l.b16 %v1431_v2 }
  0xc9   : > { %v553_v57 = vpop.f32.mrf.mxu0  ;;  %v1293_v58 = vsel %vm1280_vm2, %v1290_v32, %v1292_v52  ;;  %v1395_v26 = vpack.c.bf16 %v1076_v56, %v1076_v56  ;;  %v673_v56 = vadd.s32 80, %v3284_v16 }
  0xca   : > { %v554_v61 = vadd.f32 %v3290_v19, %v553_v57  ;;  %v1466_v0 = vpack.c.bf16 %v1293_v58, %v1293_v58 }
  0xcb   : > { %v3370_v39 = vunpack.c.l.b16 %v1395_v26 }
  0xcc   : > { %v633_v4 = vmax.f32 %v554_v61, 0.0  ;;  %1805 = vrot.lane.b32.xlu1 %v1786_v62, %s3163_s17  ;;  %v1754_v11 = vunpack.c.l.b16 %v1466_v0 }
  0xce   : > { %v998_v14 = vsel %vm962_vm8, 0.0, %v633_v4  ;;  %v1787_v15 = vpack.c.b16 %v1754_v11, %v1753_v10  ;;  %v1432_v17 = vpack.c.bf16 %v633_v4, %v633_v4  ;;  %v1294_v28 = vrot.slane %v633_v4, 1  ;;  %v3385_v10 = vld [vmem:[%s3239_s12 + $0x60] sm:$0xff] }
  0xcf   : > { %v1077_v18 = vrot.slane %v998_v14, 7  ;;  %v709_v4 = vand.u32 15, %v673_v56 }
  0xd0   : > { %1807 = vrot.lane.b32.xlu2 %v1787_v15, %s3163_s17  ;;  %v1630_v24 = vunpack.c.l.b16 %v1432_v17  ;;  %v1295_v41 = vsel %vm1280_vm2, %v1292_v52, %v1294_v28 }
  0xd1   : > { %v556_v29 = vpop.f32.mrf.mxu0  ;;  %v1078_v31 = vsel %vm1063_vm3, %v1075_v47, %v1077_v18  ;;  %v708_v47 = vand.u32 15, %v672_v36  ;;  %v1467_v49 = vpack.c.bf16 %v1295_v41, %v1295_v41  ;;  %vm1182_vm11 = vcmp.eq.s32.totalorder %v709_v4, 0 }
  0xd2   : > { %v557_v32 = vadd.f32 %v3290_v19, %v556_v29  ;;  %v1662_v33 = vpack.c.b16 %v1630_v24, %v1629_v23  ;;  %v1396_v35 = vpack.c.bf16 %v1078_v31, %v1078_v31 }
  0xd3   : > { %vm964_vm10 = vcmp.eq.s32.totalorder %v708_v47, 15  ;;  %v1755_v61 = vunpack.c.l.b16 %v1467_v49  ;;  %v2990_v47 = vld [vmem:[%s3921_s4 + $0x30] sm:$0xff] }
  0xd4   : > { %v634_v37 = vmax.f32 %v557_v32, 0.0  ;;  %2825 = vmatmul.msk.bf16.gmra.mxu0 %vm472_vm0, %v3362_v22  ;;  %1683 = vrot.lane.b32.xlu0 %v1662_v33, %s3161_s14  ;;  %v3372_v40 = vunpack.c.l.b16 %v1396_v35 }
  0xd6   : > { %v1079_v42 = vrot.slane %v634_v37, 7  ;;  %v1216_v43 = vsel %vm1180_vm9, 0.0, %v634_v37  ;;  %v1572_v44 = vpack.c.b16 %v3372_v40, %v3370_v39  ;;  %v1433_v57 = vpack.c.bf16 %v634_v37, %v634_v37 }
  0xd7   : > { %v1296_v46 = vrot.slane %v1216_v43, 1 }
  0xd8   : > { %1841 = vrot.lane.b32.xlu2 %v3242_v3, %s3159_s13  ;;  %v1080_v50 = vsel %vm1063_vm3, %v1077_v18, %v1079_v42  ;;  %v1631_v11 = vunpack.c.l.b16 %v1433_v57 }
  0xd9   : > { %v558_v53 = vpop.f32.mrf.mxu0  ;;  %v1297_v54 = vsel %vm1280_vm2, %v1294_v28, %v1296_v46  ;;  %v1397_v15 = vpack.c.bf16 %v1080_v50, %v1080_v50  ;;  %v674_v28 = vadd.s32 88, %v3284_v16 }
  0xda   : > { %v559_v55 = vadd.f32 %v3290_v19, %v558_v53  ;;  %v1468_v52 = vpack.c.bf16 %v1297_v54, %v1297_v54 }
  0xdb   : > { %v3398_v31 = vunpack.c.l.b16 %v1397_v15 }
  0xdc   : > { %v635_v58 = vmax.f32 %v559_v55, 0.0  ;;  %v1756_v62 = vunpack.c.l.b16 %v1468_v52  ;;  %v675_v55 = vadd.s32 96, %v3284_v16 }
  0xde   : > { %v1000_v0 = vsel %vm964_vm10, 0.0, %v635_v58  ;;  %v1788_v1 = vpack.c.b16 %v1756_v62, %v1755_v61  ;;  %v1434_v2 = vpack.c.bf16 %v635_v58, %v635_v58  ;;  %v1298_v17 = vrot.slane %v635_v58, 1  ;;  %v2989_v58 = vld [vmem:[%s3921_s4 + $0x28] sm:$0xff] }
  0xdf   : > { %v1081_v3 = vrot.slane %v1000_v0, 7 }
  0xe0   : > { %1809 = vrot.lane.b32.xlu1 %v1788_v1, %s3163_s17  ;;  %v1632_v14 = vunpack.c.l.b16 %v1434_v2  ;;  %1845 = vrot.lane.b32.xlu2 %v3251_v5, %s3159_s13  ;;  %v2991_v5 = vld [vmem:[%s3921_s4 + $0x38] sm:$0xff]  ;;  %v1299_v33 = vsel %vm1280_vm2, %v1296_v46, %v1298_v17  ;;  %v711_v2 = vand.u32 15, %v675_v55 }
  0xe1   : > { %v561_v18 = vpop.f32.mrf.mxu0  ;;  %v1082_v20 = vsel %vm1063_vm3, %v1079_v42, %v1081_v3  ;;  %2239 = vmatpush.bf16.msra.mxu2 %v2991_v5  ;;  %v710_v42 = vand.u32 15, %v674_v28  ;;  %v1469_v43 = vpack.c.bf16 %v1299_v33, %v1299_v33  ;;  %v676_v28 = vadd.s32 104, %v3284_v16  ;;  %v3007_v55 = vld [vmem:[%s3921_s4 + $0xb8] sm:$0xff] }
  0xe2   : > { %v562_v23 = vadd.f32 %v3290_v19, %v561_v18  ;;  %v1663_v24 = vpack.c.b16 %v1632_v14, %v1631_v11  ;;  %v1398_v26 = vpack.c.bf16 %v1082_v20, %v1082_v20  ;;  %v2988_v14 = vld [vmem:[%s3921_s4 + $0x20] sm:$0xff]  ;;  %vm1184_vm13 = vcmp.eq.s32.totalorder %v711_v2, 0  ;;  %2393 = vmatpush.bf16.msra.mxu3 %v3007_v55 }
  0xe3   : > { %vm966_vm12 = vcmp.eq.s32.totalorder %v710_v42, 15 }
  0xe4   : > { %v636_v29 = vmax.f32 %v562_v23, 0.0  ;;  %2826 = vmatmul.msk.bf16.gmra.mxu0 %vm472_vm0, %v3385_v10  ;;  %1685 = vrot.lane.b32.xlu0 %v1663_v24, %s3161_s14  ;;  %v3400_v32 = vunpack.c.l.b16 %v1398_v26 }
  0xe5   : > { %2240 = vmatpush.bf16.msra.mxu2 %v2990_v47 }
  0xe6   : > { %v1083_v35 = vrot.slane %v636_v29, 7  ;;  %v1218_v36 = vsel %vm1182_vm11, 0.0, %v636_v29  ;;  %v1573_v37 = vpack.c.b16 %v3400_v32, %v3398_v31  ;;  %v1435_v52 = vpack.c.bf16 %v636_v29, %v636_v29 }
  0xe7   : > { %v1300_v41 = vrot.slane %v1218_v36, 1 }
  0xe8   : > { %1847 = vrot.lane.b32.xlu2 %v3256_v6, %s3159_s13  ;;  %v1084_v49 = vsel %vm1063_vm3, %v1081_v3, %v1083_v35  ;;  %v1757_v6 = vunpack.c.l.b16 %v1469_v43  ;;  %v3419_v3 = vld [vmem:[%s3239_s12 + $0x68] sm:$0xff]  ;;  %v1633_v4 = vunpack.c.l.b16 %v1435_v52 }
  0xe9   : > { %v563_v50 = vpop.f32.mrf.mxu0  ;;  %v1301_v46 = vsel %vm1280_vm2, %v1298_v17, %v1300_v41  ;;  %2241 = vmatpush.bf16.msra.mxu2 %v2989_v58  ;;  %v1399_v15 = vpack.c.bf16 %v1084_v49, %v1084_v49  ;;  %v712_v49 = vand.u32 15, %v676_v28 }
  0xea   : > { %v564_v53 = vadd.f32 %v3290_v19, %v563_v50  ;;  %v1470_v54 = vpack.c.bf16 %v1301_v46, %v1301_v46  ;;  %v2986_v46 = vld [vmem:[%s3921_s4 + $0x10] sm:$0xff] }
  0xeb   : > { %v3435_v5 = vunpack.c.l.b16 %v1399_v15  ;;  %vm968_vm14 = vcmp.eq.s32.totalorder %v712_v49, 15  ;;  %v3461_v15 = vld [vmem:[%s3239_s12 + $0x70] sm:$0xff] }
  0xec   : > { %v637_v56 = vmax.f32 %v564_v53, 0.0  ;;  %v1758_v57 = vunpack.c.l.b16 %v1470_v54 }
  0xed   : > { %2242 = vmatpush.bf16.msra.mxu2 %v2988_v14 }
  0xee   : > { %v1002_v61 = vsel %vm966_vm12, 0.0, %v637_v56  ;;  %v1789_v62 = vpack.c.b16 %v1758_v57, %v1757_v6  ;;  %v1436_v0 = vpack.c.bf16 %v637_v56, %v637_v56  ;;  %v1302_v17 = vrot.slane %v637_v56, 1 }
  0xef   : > { %v1085_v1 = vrot.slane %v1002_v61, 7  ;;  %v677_v6 = vadd.s32 112, %v3284_v16 }
  0xf0   : > { %1811 = vrot.lane.b32.xlu1 %v1789_v62, %s3163_s17  ;;  %v1634_v11 = vunpack.c.l.b16 %v1436_v0  ;;  %1849 = vrot.lane.b32.xlu2 %v3261_v7, %s3159_s13  ;;  %v2987_v7 = vld [vmem:[%s3921_s4 + $0x18] sm:$0xff]  ;;  %v2985_v62 = vld [vmem:[%s3921_s4 + $0x8] sm:$0xff] }
  0xf1   : > { %v566_v18 = vpop.f32.mrf.mxu0  ;;  %v1086_v20 = vsel %vm1063_vm3, %v1083_v35, %v1085_v1  ;;  %v1303_v35 = vsel %vm1280_vm2, %v1300_v41, %v1302_v17  ;;  %2243 = vmatpush.bf16.msra.mxu2 %v2987_v7  ;;  %v3006_v0 = vld [vmem:[%s3921_s4 + $0xb0] sm:$0xff]  ;;  %v713_v14 = vand.u32 15, %v677_v6 }
  0xf2   : > { %v567_v23 = vadd.f32 %v3290_v19, %v566_v18  ;;  %v1664_v24 = vpack.c.b16 %v1634_v11, %v1633_v4  ;;  %v1400_v26 = vpack.c.bf16 %v1086_v20, %v1086_v20  ;;  %v1471_v50 = vpack.c.bf16 %v1303_v35, %v1303_v35  ;;  %2394 = vmatpush.bf16.msra.mxu3 %v3006_v0  ;;  %v2999_v20 = vld [vmem:[%s3921_s4 + $0x78] sm:$0xff] }
  0xf3   : > { %2102 = vmatpush.bf16.msra.mxu1 %v2999_v20  ;;  %vm1186_vm15 = vcmp.eq.s32.totalorder %v713_v14, 0  ;;  %v3003_v0 = vld [vmem:[%s3921_s4 + $0x98] sm:$0xff]  ;;  %v3002_v20 = vld [vmem:[%s3921_s4 + $0x90] sm:$0xff] }
  0xf4   : > { %v638_v29 = vmax.f32 %v567_v23, 0.0  ;;  %2827 = vmatmul.msk.bf16.gmra.mxu0 %vm472_vm0, %v3419_v3  ;;  %1687 = vrot.lane.b32.xlu0 %v1664_v24, %s3161_s14  ;;  %v3437_v33 = vunpack.c.l.b16 %v1400_v26  ;;  %v1759_v58 = vunpack.c.l.b16 %v1471_v50  ;;  %v2984_v23 = vld [vmem:[%s3921_s4] sm:$0xff]  ;;  %v678_v50 = vadd.s32 120, %v3284_v16 }
  0xf5   : > { %2244 = vmatpush.bf16.msra.mxu2 %v2986_v46 }
  0xf6   : > { %v1087_v36 = vrot.slane %v638_v29, 7  ;;  %v1220_v42 = vsel %vm1184_vm13, 0.0, %v638_v29  ;;  %v1574_v43 = vpack.c.b16 %v3437_v33, %v3435_v5  ;;  %v1437_v57 = vpack.c.bf16 %v638_v29, %v638_v29  ;;  %v3005_v29 = vld [vmem:[%s3921_s4 + $0xa8] sm:$0xff] }
  0xf7   : > { %v1304_v47 = vrot.slane %v1220_v42, 1  ;;  %2395 = vmatpush.bf16.msra.mxu3 %v3005_v29 }
  0xf8   : > { %1851 = vrot.lane.b32.xlu2 %v3266_v8, %s3159_s13  ;;  %v1088_v53 = vsel %vm1063_vm3, %v1085_v1, %v1087_v36 }
  0xf9   : > { %v568_v54 = vpop.f32.mrf.mxu0  ;;  %v1305_v41 = vsel %vm1280_vm2, %v1302_v17, %v1304_v47  ;;  %2245 = vmatpush.bf16.msra.mxu2 %v2985_v62  ;;  %v1635_v17 = vunpack.c.l.b16 %v1437_v57  ;;  %v1401_v24 = vpack.c.bf16 %v1088_v53, %v1088_v53  ;;  %v714_v57 = vand.u32 15, %v678_v50  ;;  %v2995_v50 = vld [vmem:[%s3921_s4 + $0x58] sm:$0xff] }
  0xfa   : > { %v569_v52 = vadd.f32 %v3290_v19, %v568_v54  ;;  %v1472_v56 = vpack.c.bf16 %v1305_v41, %v1305_v41  ;;  %v3004_v41 = vld [vmem:[%s3921_s4 + $0xa0] sm:$0xff] }
  0xfb   : > { %v3484_v46 = vunpack.c.l.b16 %v1401_v24  ;;  %2396 = vmatpush.bf16.msra.mxu3 %v3004_v41  ;;  %vm970_vm1 = vcmp.eq.s32.totalorder %v714_v57, 15  ;;  %v3001_v41 = vld [vmem:[%s3921_s4 + $0x88] sm:$0xff] }
  0xfc   : > { %v639_v8 = vmax.f32 %v569_v52, 0.0  ;;  %v1760_v61 = vunpack.c.l.b16 %v1472_v56 }
  0xfd   : > { %2246 = vmatpush.bf16.msra.mxu2 %v2984_v23 }
  0xfe   : > { %v1004_v1 = vsel %vm968_vm14, 0.0, %v639_v8  ;;  %v1438_v2 = vpack.c.bf16 %v639_v8, %v639_v8  ;;  %v1790_v4 = vpack.c.b16 %v1760_v61, %v1759_v58  ;;  %v1306_v26 = vrot.slane %v639_v8, 1  ;;  %v2997_v58 = vld [vmem:[%s3921_s4 + $0x68] sm:$0xff] }
  0xff   : > { %v1089_v11 = vrot.slane %v1004_v1, 7  ;;  %2397 = vmatpush.bf16.msra.mxu3 %v3003_v0 }
 0x100   : > { %1813 = vrot.lane.b32.xlu1 %v1790_v4, %s3163_s17  ;;  %v1636_v18 = vunpack.c.l.b16 %v1438_v2  ;;  %1853 = vrot.lane.b32.xlu2 %v3271_v9, %s3159_s13  ;;  %v1307_v54 = vsel %vm1280_vm2, %v1304_v47, %v1306_v26  ;;  %v679_v4 = vadd.s32 128, %v3284_v16 }
 0x101   : > { %v571_v28 = vpop.f32.mrf.mxu0  ;;  %v1090_v7 = vsel %vm1063_vm3, %v1087_v36, %v1089_v11  ;;  %v2998_v36 = vld [vmem:[%s3921_s4 + $0x70] sm:$0xff]  ;;  %v1473_v8 = vpack.c.bf16 %v1307_v54, %v1307_v54 }
 0x102   : > { %v572_v35 = vadd.f32 %v3290_v19, %v571_v28  ;;  %v1665_v42 = vpack.c.b16 %v1636_v18, %v1635_v17  ;;  %v1402_v49 = vpack.c.bf16 %v1090_v7, %v1090_v7  ;;  %2103 = vmatpush.bf16.msra.mxu1 %v2998_v36  ;;  %v2996_v18 = vld [vmem:[%s3921_s4 + $0x60] sm:$0xff]  ;;  %v715_v29 = vand.u32 15, %v679_v4  ;;  %v3514_v7 = vld [vmem:[%s3239_s12 + $0x78] sm:$0xff] }
 0x103   : > { %v1761_v17 = vunpack.c.l.b16 %v1473_v8  ;;  %2398 = vmatpush.bf16.msra.mxu3 %v3002_v20 }
 0x104   : > { %v640_v9 = vmax.f32 %v572_v35, 0.0  ;;  %2828 = vmatmul.msk.bf16.gmra.mxu0 %vm472_vm0, %v3461_v15  ;;  %1689 = vrot.lane.b32.xlu0 %v1665_v42, %s3161_s14  ;;  %v3486_v53 = vunpack.c.l.b16 %v1402_v49  ;;  %v1171_v49 = vsel %vm1063_vm3, 0.0, %v3305_v34  ;;  %vm3528_vm4 = vcmp.eq.s32.totalorder %v715_v29, 0  ;;  %v2993_v29 = vld [vmem:[%s3921_s4 + $0x48] sm:$0xff] }
 0x106   : > { %v1091_v55 = vrot.slane %v640_v9, 7  ;;  %v1222_v52 = vsel %vm1186_vm15, 0.0, %v640_v9  ;;  %v1575_v56 = vpack.c.b16 %v3486_v53, %v3484_v46  ;;  %2104 = vmatpush.bf16.msra.mxu1 %v2997_v58  ;;  %v1439_v14 = vpack.c.bf16 %v640_v9, %v640_v9 }
 0x107   : > { %v1308_v6 = vrot.slane %v1222_v52, 1  ;;  %2399 = vmatpush.bf16.msra.mxu3 %v3001_v41  ;;  %v681_v41 = vadd.s32 144, %v3284_v16 }
 0x108   : > { %1855 = vrot.lane.b32.xlu2 %v3280_v13, %s3159_s13  ;;  %v1092_v47 = vsel %vm1063_vm3, %v1089_v11, %v1091_v55  ;;  %v1637_v35 = vunpack.c.l.b16 %v1439_v14  ;;  %v3000_v14 = vld [vmem:[%s3921_s4 + $0x80] sm:$0xff] }
 0x109   : > { %v573_v61 = vpop.f32.mrf.mxu0  ;;  %v1309_v62 = vsel %vm1280_vm2, %v1306_v26, %v1308_v6  ;;  %v1403_v9 = vpack.c.bf16 %v1092_v47, %v1092_v47  ;;  %v1389_v47 = vpack.c.bf16 %v1171_v49, %v1171_v49 }
 0x10a   : > { %v574_v1 = vadd.f32 %v3290_v19, %v573_v61  ;;  %v1474_v2 = vpack.c.bf16 %v1309_v62, %v1309_v62  ;;  %2105 = vmatpush.bf16.msra.mxu1 %v2996_v18  ;;  %v1390_v62 = vpack.c.bf16 %v3305_v34, %v3305_v34 }
 0x10b   : > { %2400 = vmatpush.bf16.msra.mxu3 %v3000_v14 }
 0x10c   : > { %v641_v13 = vmax.f32 %v574_v1, 0.0  ;;  %v1762_v11 = vunpack.c.l.b16 %v1474_v2  ;;  %v3541_v1 = vunpack.c.l.b16 %v1403_v9 }
 0x10e   : > { %v1006_v23 = vsel %vm970_vm1, 0.0, %v641_v13  ;;  %v1440_v24 = vpack.c.bf16 %v641_v13, %v641_v13  ;;  %v1791_v26 = vpack.c.b16 %v1762_v11, %v1761_v17  ;;  %v1310_v36 = vrot.slane %v641_v13, 1  ;;  %2106 = vmatpush.bf16.msra.mxu1 %v2995_v50 }
 0x10f   : > { %v1093_v28 = vrot.slane %v1006_v23, 7  ;;  %v1533_v23 = vunpack.c.l.b16 %v1389_v47  ;;  %v717_v47 = vand.u32 15, %v681_v41 }
 0x110   : > { %1815 = vrot.lane.b32.xlu1 %v1791_v26, %s3163_s17  ;;  %v1638_v42 = vunpack.c.l.b16 %v1440_v24  ;;  %1857 = vrot.lane.b32.xlu2 %v3293_v21, %s3159_s13  ;;  %v680_v21 = vadd.s32 136, %v3284_v16  ;;  %v1311_v4 = vsel %vm1280_vm2, %v1308_v6, %v1310_v36  ;;  %v3553_v24 = vunpack.c.l.b16 %v1390_v62  ;;  %v1678_v26 = vpop.permute.xlu0 %1677 }
 0x111   : > { %v576_v54 = vpop.f32.mrf.mxu0  ;;  %v1094_v52 = vsel %vm1063_vm3, %v1091_v55, %v1093_v28  ;;  %v2994_v55 = vld [vmem:[%s3921_s4 + $0x50] sm:$0xff]  ;;  %v1475_v6 = vpack.c.bf16 %v1311_v4, %v1311_v4  ;;  %vm1190_vm8 = vcmp.eq.s32.totalorder %v717_v47, 0 }
 0x112   : > { %v577_v57 = vadd.f32 %v3290_v19, %v576_v54  ;;  %v1666_v8 = vpack.c.b16 %v1638_v42, %v1637_v35  ;;  %v1404_v58 = vpack.c.bf16 %v1094_v52, %v1094_v52  ;;  %2107 = vmatpush.bf16.msra.mxu1 %v2994_v55  ;;  %v716_v20 = vand.u32 15, %v680_v21 }
 0x113   : > { %v1569_v54 = vpack.c.b16 %v3553_v24, %v1533_v23 }
 0x114   : > { %v642_v0 = vmax.f32 %v577_v57, 0.0  ;;  %2829 = vmatmul.msk.bf16.gmra.mxu0 %vm472_vm0, %v3514_v7  ;;  %1691 = vrot.lane.b32.xlu0 %v1666_v8, %s3161_s14  ;;  %v3543_v2 = vunpack.c.l.b16 %v1404_v58  ;;  %vm972_vm5 = vcmp.eq.s32.totalorder %v716_v20, 15  ;;  %v1763_v8 = vunpack.c.l.b16 %v1475_v6  ;;  %v1840_v20 = vpop.permute.xlu1 %1839 }
 0x115   : > { %v1877_v62 = vsel %vm472_vm0, %v1569_v54, %v1678_v26 }
 0x116   : > { %v1095_v13 = vrot.slane %v642_v0, 7  ;;  %v1224_v17 = vsel %vm3528_vm4, 0.0, %v642_v0  ;;  %v1576_v11 = vpack.c.b16 %v3543_v2, %v3541_v1  ;;  %2108 = vmatpush.bf16.msra.mxu1 %v2993_v29  ;;  %v1441_v52 = vpack.c.bf16 %v642_v0, %v642_v0 }
 0x117   : > { %v1312_v18 = vrot.slane %v1224_v17, 1 }
 0x118   : > { %1859 = vrot.lane.b32.xlu2 %v3319_v48, %s3159_s13  ;;  %v1096_v35 = vsel %vm1063_vm3, %v1093_v28, %v1095_v13  ;;  %v2992_v48 = vld [vmem:[%s3921_s4 + $0x40] sm:$0xff]  ;;  %v1639_v55 = vunpack.c.l.b16 %v1441_v52 }
 0x119   : > { %v578_v42 = vpop.f32.mrf.mxu0  ;;  %v1313_v49 = vsel %vm1280_vm2, %v1310_v36, %v1312_v18  ;;  %v1405_v4 = vpack.c.bf16 %v1096_v35, %v1096_v35 }
 0x11a   : > { %v579_v50 = vadd.f32 %v3290_v19, %v578_v42  ;;  %v1476_v9 = vpack.c.bf16 %v1313_v49, %v1313_v49  ;;  %2109 = vmatpush.bf16.msra.mxu1 %v2992_v48 }
 0x11b   : > { %v3578_v35 = vunpack.c.l.b16 %v1405_v4 }
 0x11c   : > { %v643_v57 = vmax.f32 %v579_v50, 0.0  ;;  %v1764_v58 = vunpack.c.l.b16 %v1476_v9  ;;  %v682_v50 = vadd.s32 152, %v3284_v16 }
 0x11e   : > { %v1008_v28 = vsel %vm972_vm5, 0.0, %v643_v57  ;;  %v1442_v61 = vpack.c.bf16 %v643_v57, %v643_v57  ;;  %v1792_v36 = vpack.c.b16 %v1764_v58, %v1763_v8  ;;  %v1314_v14 = vrot.slane %v643_v57, 1 }
 0x11f   : > { %v1097_v21 = vrot.slane %v1008_v28, 7  ;;  %v718_v58 = vand.u32 15, %v682_v50 }
 0x120   : > { %1817 = vrot.lane.b32.xlu1 %v1792_v36, %s3163_s17  ;;  %v1640_v0 = vunpack.c.l.b16 %v1442_v61  ;;  %1861 = vrot.lane.b32.xlu2 %v3338_v27, %s3159_s13 }
 0x121   : > { %v581_v17 = vpop.f32.mrf.mxu0  ;;  %v1098_v23 = vsel %vm1063_vm3, %v1095_v13, %v1097_v21  ;;  %v1315_v13 = vsel %vm1280_vm2, %v1312_v18, %v1314_v14  ;;  %v1844_v18 = vpop.permute.xlu2 %1843  ;;  %vm974_vm9 = vcmp.eq.s32.totalorder %v718_v58, 15  ;;  %v684_v58 = vadd.s32 168, %v3284_v16 }
 0x122   : > { %v582_v6 = vadd.f32 %v3290_v19, %v581_v17  ;;  %v1804_v29 = vpop.permute.xlu0 %1803  ;;  %v1667_v42 = vpack.c.b16 %v1640_v0, %v1639_v55  ;;  %v1406_v49 = vpack.c.bf16 %v1098_v23, %v1098_v23  ;;  %v1477_v48 = vpack.c.bf16 %v1315_v13, %v1315_v13 }
 0x123   : > { %v1931_v26 = vsel %vm1929_vm6, %v1877_v62, %v1804_v29  ;;  %v683_v55 = vadd.s32 160, %v3284_v16 }
 0x124   : > { %v644_v9 = vmax.f32 %v582_v6, 0.0  ;;  %1693 = vrot.lane.b32.xlu0 %v1667_v42, %s3161_s14  ;;  %v1968_v27 = vsel %vm1966_vm7, %v1931_v26, %v1840_v20  ;;  %v3580_v54 = vunpack.c.l.b16 %v1406_v49  ;;  %v1765_v17 = vunpack.c.l.b16 %v1477_v48 }
 0x125   : > { %2247 = vmatmul.bf16.vlgmr.msra.gmra.mxu2 %v1968_v27  ;;  %v719_v42 = vand.u32 15, %v683_v55 }
 0x126   : > { %v1099_v41 = vrot.slane %v644_v9, 7  ;;  %v1226_v52 = vsel %vm1190_vm8, 0.0, %v644_v9  ;;  %v1577_v57 = vpack.c.b16 %v3580_v54, %v3578_v35  ;;  %v1443_v0 = vpack.c.bf16 %v644_v9, %v644_v9 }
 0x127   : > { %v1316_v8 = vrot.slane %v1226_v52, 1  ;;  %vm1192_vm10 = vcmp.eq.s32.totalorder %v719_v42, 0 }
 0x128   : > { %1863 = vrot.lane.b32.xlu2 %v3362_v22, %s3159_s13  ;;  %v1100_v28 = vsel %vm1063_vm3, %v1097_v21, %v1099_v41  ;;  %v1641_v21 = vunpack.c.l.b16 %v1443_v0 }
 0x129   : > { %v583_v61 = vpop.f32.mrf.mxu0  ;;  %v1317_v36 = vsel %vm1280_vm2, %v1314_v14, %v1316_v8  ;;  %v1407_v49 = vpack.c.bf16 %v1100_v28, %v1100_v28 }
 0x12a   : > { %v584_v47 = vadd.f32 %v3290_v19, %v583_v61  ;;  %v1478_v62 = vpack.c.bf16 %v1317_v36, %v1317_v36  ;;  %v1680_v30 = vpop.permute.xlu0 %1679 }
 0x12b   : > { %v3598_v61 = vunpack.c.l.b16 %v1407_v49 }
 0x12c   : > { %v645_v4 = vmax.f32 %v584_v47, 0.0  ;;  %v1766_v20 = vunpack.c.l.b16 %v1478_v62 }
 0x12e   : > { %v1010_v23 = vsel %vm974_vm9, 0.0, %v645_v4  ;;  %v1444_v6 = vpack.c.bf16 %v645_v4, %v645_v4  ;;  %v1793_v29 = vpack.c.b16 %v1766_v20, %v1765_v17  ;;  %v1318_v26 = vrot.slane %v645_v4, 1 }
 0x12f   : > { %v1101_v22 = vrot.slane %v1010_v23, 7  ;;  %v720_v17 = vand.u32 15, %v684_v58 }
 0x130   : > { %1819 = vrot.lane.b32.xlu1 %v1793_v29, %s3163_s17  ;;  %v1642_v14 = vunpack.c.l.b16 %v1444_v6  ;;  %1865 = vrot.lane.b32.xlu2 %v3385_v10, %s3159_s13  ;;  %v1808_v10 = vpop.permute.xlu2 %1807  ;;  %v1319_v28 = vsel %vm1280_vm2, %v1316_v8, %v1318_v26 }
 0x131   : > { %v586_v50 = vpop.f32.mrf.mxu0  ;;  %v1102_v9 = vsel %vm1063_vm3, %v1099_v41, %v1101_v22  ;;  %v1479_v23 = vpack.c.bf16 %v1319_v28, %v1319_v28  ;;  %vm976_vm11 = vcmp.eq.s32.totalorder %v720_v17, 15 }
 0x132   : > { %v587_v27 = vadd.f32 %v3290_v19, %v586_v50  ;;  %v1668_v13 = vpack.c.b16 %v1642_v14, %v1641_v21  ;;  %v1408_v52 = vpack.c.bf16 %v1102_v9, %v1102_v9 }
 0x134   : > { %v646_v48 = vmax.f32 %v587_v27, 0.0  ;;  %1695 = vrot.lane.b32.xlu0 %v1668_v13, %s3161_s14  ;;  %v3600_v36 = vunpack.c.l.b16 %v1408_v52 }
 0x136   : > { %v1103_v47 = vrot.slane %v646_v48, 7  ;;  %v1228_v62 = vsel %vm1192_vm10, 0.0, %v646_v48  ;;  %v1682_v41 = vpop.permute.xlu1 %1681  ;;  %v1578_v55 = vpack.c.b16 %v3600_v36, %v3598_v61  ;;  %v1445_v14 = vpack.c.bf16 %v646_v48, %v646_v48 }
 0x137   : > { %v1320_v0 = vrot.slane %v1228_v62, 1  ;;  %v1883_v4 = vsel %vm472_vm0, %v1571_v51, %v1682_v41  ;;  %v685_v51 = vadd.s32 176, %v3284_v16 }
 0x138   : > { %v1935_v20 = vsel %vm1929_vm6, %v1883_v4, %v1808_v10  ;;  %1867 = vrot.lane.b32.xlu2 %v3419_v3, %s3159_s13  ;;  %v1104_v8 = vsel %vm1063_vm3, %v1101_v22, %v1103_v47  ;;  %v1767_v3 = vunpack.c.l.b16 %v1479_v23  ;;  %v1842_v22 = vpop.permute.xlu2 %1841  ;;  %v1643_v28 = vunpack.c.l.b16 %v1445_v14 }
 0x139   : > { %v588_v6 = vpop.f32.mrf.mxu0  ;;  %v3614_v29 = vsel %vm1966_vm7, %v1935_v20, %v1844_v18  ;;  %v1321_v42 = vsel %vm1280_vm2, %v1318_v26, %v1320_v0  ;;  %v1880_v18 = vsel %vm472_vm0, %v1570_v63, %v1680_v30  ;;  %v721_v10 = vand.u32 15, %v685_v51 }
 0x13a   : > { %v589_v21 = vadd.f32 %v3290_v19, %v588_v6  ;;  %2401 = vmatmul.bf16.vlgmr.msra.gmra.mxu3 %v3614_v29  ;;  %v1480_v45 = vpack.c.bf16 %v1321_v42, %v1321_v42  ;;  %v1409_v41 = vpack.c.bf16 %v1104_v8, %v1104_v8  ;;  %v686_v23 = vadd.s32 184, %v3284_v16 }
 0x13b   : > { %vm1194_vm12 = vcmp.eq.s32.totalorder %v721_v10, 0 }
 0x13c   : > { %v647_v49 = vmax.f32 %v589_v21, 0.0  ;;  %v1768_v50 = vunpack.c.l.b16 %v1480_v45  ;;  %v3633_v8 = vunpack.c.l.b16 %v1409_v41  ;;  %v722_v30 = vand.u32 15, %v686_v23 }
 0x13e   : > { %v1012_v26 = vsel %vm976_vm11, 0.0, %v647_v49  ;;  %v1446_v9 = vpack.c.bf16 %v647_v49, %v647_v49  ;;  %v1806_v27 = vpop.permute.xlu1 %1805  ;;  %v1794_v13 = vpack.c.b16 %v1768_v50, %v1767_v3  ;;  %v1322_v59 = vrot.slane %v647_v49, 1 }
 0x13f   : > { %v1105_v52 = vrot.slane %v1012_v26, 7  ;;  %v1933_v58 = vsel %vm1929_vm6, %v1880_v18, %v1806_v27  ;;  %vm978_vm13 = vcmp.eq.s32.totalorder %v722_v30, 15  ;;  %v687_v18 = vadd.s32 192, %v3284_v16 }
 0x140   : > { %1821 = vrot.lane.b32.xlu1 %v1794_v13, %s3163_s17  ;;  %v1971_v48 = vsel %vm1966_vm7, %v1933_v58, %v1842_v22  ;;  %v1644_v62 = vunpack.c.l.b16 %v1446_v9  ;;  %1869 = vrot.lane.b32.xlu2 %v3461_v15, %s3159_s13  ;;  %v1323_v15 = vsel %vm1280_vm2, %v1320_v0, %v1322_v59  ;;  %v3647_v0 = vld [vmem:[%s3920_s3] ss:$0 sm:$0xff] }
 0x141   : > { %v591_v60 = vpop.f32.mrf.mxu0  ;;  %2110 = vmatmul.bf16.vlgmr.msra.gmra.mxu1 %v1971_v48  ;;  %2252 = vmatmul.bf16.gmra.mxu2 %v1971_v48  ;;  %v1106_v63 = vsel %vm1063_vm3, %v1103_v47, %v1105_v52  ;;  %v1481_v51 = vpack.c.bf16 %v1323_v15, %v1323_v15 }
 0x142   : > { %v592_v4 = vadd.f32 %v3290_v19, %v591_v60  ;;  %v1669_v17 = vpack.c.b16 %v1644_v62, %v1643_v28  ;;  %v1410_v20 = vpack.c.bf16 %v1106_v63, %v1106_v63  ;;  %v723_v28 = vand.u32 15, %v687_v18 }
 0x143   : > { %v1769_v27 = vunpack.c.l.b16 %v1481_v51  ;;  %v688_v51 = vadd.s32 200, %v3284_v16 }
 0x144   : > { %v648_v6 = vmax.f32 %v592_v4, 0.0  ;;  %1697 = vrot.lane.b32.xlu0 %v1669_v17, %s3161_s14  ;;  %v3635_v42 = vunpack.c.l.b16 %v1410_v20  ;;  %v1846_v4 = vpop.permute.xlu2 %1845  ;;  %vm1196_vm14 = vcmp.eq.s32.totalorder %v723_v28, 0 }
 0x146   : > { %v1107_v21 = vrot.slane %v648_v6, 7  ;;  %v1230_v45 = vsel %vm1194_vm12, 0.0, %v648_v6  ;;  %v1579_v47 = vpack.c.b16 %v3635_v42, %v3633_v8  ;;  %v1447_v26 = vpack.c.bf16 %v648_v6, %v648_v6  ;;  %v1684_v10 = vpop.permute.xlu0 %1683 }
 0x147   : > { %v1324_v19 = vrot.slane %v1230_v45, 1  ;;  %v1886_v20 = vsel %vm472_vm0, %v1572_v44, %v1684_v10 }
 0x148   : > { %1871 = vrot.lane.b32.xlu2 %v3514_v7, %s3159_s13  ;;  %v1108_v14 = vsel %vm1063_vm3, %v1105_v52, %v1107_v21  ;;  %v1645_v62 = vunpack.c.l.b16 %v1447_v26 }
 0x149   : > { %v593_v49 = vpop.f32.mrf.mxu0  ;;  %v1325_v3 = vsel %vm1280_vm2, %v1322_v59, %v1324_v19  ;;  %v1411_v59 = vpack.c.bf16 %v1108_v14, %v1108_v14 }
 0x14a   : > { %v594_v50 = vadd.f32 %v3647_v0, %v593_v49  ;;  %v1482_v22 = vpack.c.bf16 %v1325_v3, %v1325_v3 }
 0x14c   : > { %v649_v9 = vmax.f32 %v594_v50, 0.0  ;;  %v1770_v7 = vunpack.c.l.b16 %v1482_v22  ;;  %v724_v22 = vand.u32 15, %v688_v51 }
 0x14e   : > { %v1014_v13 = vsel %vm978_vm13, 0.0, %v649_v9  ;;  %v1448_v52 = vpack.c.bf16 %v649_v9, %v649_v9  ;;  %v1795_v58 = vpack.c.b16 %v1770_v7, %v1769_v27  ;;  %v1326_v60 = vrot.slane %v649_v9, 1 }
 0x14f   : > { %v1109_v48 = vrot.slane %v1014_v13, 7  ;;  %vm980_vm15 = vcmp.eq.s32.totalorder %v724_v22, 15 }
 0x150   : > { %1823 = vrot.lane.b32.xlu1 %v1795_v58, %s3163_s17  ;;  %v1646_v41 = vunpack.c.l.b16 %v1448_v52  ;;  %v1327_v40 = vsel %vm1280_vm2, %v1324_v19, %v1326_v60  ;;  %v689_v52 = vadd.s32 208, %v3284_v16 }
 0x151   : > { %v596_v63 = vpop.f32.mrf.mxu0  ;;  %2115 = vmatmul.bf16.gmra.mxu1 %v3614_v29  ;;  %2257 = vmatmul.bf16.gmra.mxu2 %v3614_v29  ;;  %v1110_v17 = vsel %vm1063_vm3, %v1107_v21, %v1109_v48  ;;  %v3664_v21 = vunpack.c.l.b16 %v1411_v59  ;;  %v1483_v18 = vpack.c.bf16 %v1327_v40, %v1327_v40 }
 0x152   : > { %v597_v23 = vadd.f32 %v3647_v0, %v596_v63  ;;  %v1810_v6 = vpop.permute.xlu1 %1809  ;;  %v1670_v15 = vpack.c.b16 %v1646_v41, %v1645_v62  ;;  %v1412_v45 = vpack.c.bf16 %v1110_v17, %v1110_v17  ;;  %v725_v17 = vand.u32 15, %v689_v52 }
 0x153   : > { %v1937_v30 = vsel %vm1929_vm6, %v1886_v20, %v1810_v6  ;;  %v1771_v10 = vunpack.c.l.b16 %v1483_v18  ;;  %v690_v18 = vadd.s32 216, %v3284_v16 }
 0x154   : > { %v650_v14 = vmax.f32 %v597_v23, 0.0  ;;  %1699 = vrot.lane.b32.xlu0 %v1670_v15, %s3161_s14  ;;  %v1977_v29 = vsel %vm1966_vm7, %v1937_v30, %v1846_v4  ;;  %v3666_v39 = vunpack.c.l.b16 %v1412_v45  ;;  %v1848_v15 = vpop.permute.xlu2 %1847  ;;  %vm1198_vm1 = vcmp.eq.s32.totalorder %v725_v17, 0 }
 0x155   : > { %2406 = vmatmul.bf16.gmra.mxu3 %v1977_v29 }
 0x156   : > { %v1111_v44 = vrot.slane %v650_v14, 7  ;;  %v1232_v49 = vsel %vm1196_vm14, 0.0, %v650_v14  ;;  %v1580_v3 = vpack.c.b16 %v3666_v39, %v3664_v21  ;;  %v1449_v19 = vpack.c.bf16 %v650_v14, %v650_v14  ;;  %v1686_v63 = vpop.permute.xlu0 %1685 }
 0x157   : > { %v1328_v50 = vrot.slane %v1232_v49, 1  ;;  %v1889_v30 = vsel %vm472_vm0, %v1573_v37, %v1686_v63 }
 0x158   : > { %v1112_v26 = vsel %vm1063_vm3, %v1109_v48, %v1111_v44  ;;  %v1647_v48 = vunpack.c.l.b16 %v1449_v19 }
 0x159   : > { %v598_v9 = vpop.f32.mrf.mxu0  ;;  %v1329_v27 = vsel %vm1280_vm2, %v1326_v60, %v1328_v50  ;;  %v1413_v20 = vpack.c.bf16 %v1112_v26, %v1112_v26 }
 0x15a   : > { %v599_v7 = vadd.f32 %v3647_v0, %v598_v9  ;;  %v1484_v13 = vpack.c.bf16 %v1329_v27, %v1329_v27 }
 0x15c   : > { %v651_v58 = vmax.f32 %v599_v7, 0.0  ;;  %v1772_v28 = vunpack.c.l.b16 %v1484_v13  ;;  %v726_v13 = vand.u32 15, %v690_v18 }
 0x15e   : > { %v1016_v62 = vsel %vm980_vm15, 0.0, %v651_v58  ;;  %v1450_v41 = vpack.c.bf16 %v651_v58, %v651_v58  ;;  %v1796_v59 = vpack.c.b16 %v1772_v28, %v1771_v10  ;;  %v1330_v23 = vrot.slane %v651_v58, 1 }
 0x15f   : > { %v1113_v4 = vrot.slane %v1016_v62, 7  ;;  %vm982_vm4 = vcmp.eq.s32.totalorder %v726_v13, 15 }
 0x160   : > { %1825 = vrot.lane.b32.xlu1 %v1796_v59, %s3163_s17  ;;  %v1648_v60 = vunpack.c.l.b16 %v1450_v41  ;;  %v1331_v32 = vsel %vm1280_vm2, %v1328_v50, %v1330_v23  ;;  %v691_v41 = vadd.s32 224, %v3284_v16 }
 0x161   : > { %v601_v6 = vpop.f32.mrf.mxu0  ;;  %2120 = vmatmul.bf16.gmra.mxu1 %v1977_v29  ;;  %2262 = vmatmul.bf16.gmra.mxu2 %v1977_v29  ;;  %v1114_v45 = vsel %vm1063_vm3, %v1111_v44, %v1113_v4  ;;  %v3686_v44 = vunpack.c.l.b16 %v1413_v20  ;;  %v1485_v52 = vpack.c.bf16 %v1331_v32, %v1331_v32 }
 0x162   : > { %v602_v51 = vadd.f32 %v3647_v0, %v601_v6  ;;  %v1812_v14 = vpop.permute.xlu1 %1811  ;;  %v1671_v40 = vpack.c.b16 %v1648_v60, %v1647_v48  ;;  %v1414_v49 = vpack.c.bf16 %v1114_v45, %v1114_v45  ;;  %v727_v45 = vand.u32 15, %v691_v41 }
 0x163   : > { %v1939_v22 = vsel %vm1929_vm6, %v1889_v30, %v1812_v14  ;;  %v1773_v63 = vunpack.c.l.b16 %v1485_v52  ;;  %v692_v52 = vadd.s32 232, %v3284_v16 }
 0x164   : > { %v652_v26 = vmax.f32 %v602_v51, 0.0  ;;  %1701 = vrot.lane.b32.xlu0 %v1671_v40, %s3161_s14  ;;  %v1980_v29 = vsel %vm1966_vm7, %v1939_v22, %v1848_v15  ;;  %v3688_v31 = vunpack.c.l.b16 %v1414_v49  ;;  %v1850_v40 = vpop.permute.xlu2 %1849  ;;  %vm1200_vm5 = vcmp.eq.s32.totalorder %v727_v45, 0 }
 0x165   : > { %2411 = vmatmul.bf16.gmra.mxu3 %v1980_v29 }
 0x166   : > { %v1115_v37 = vrot.slane %v652_v26, 7  ;;  %v1234_v9 = vsel %vm1198_vm1, 0.0, %v652_v26  ;;  %v1581_v27 = vpack.c.b16 %v3688_v31, %v3686_v44  ;;  %v1451_v50 = vpack.c.bf16 %v652_v26, %v652_v26  ;;  %v1688_v6 = vpop.permute.xlu0 %1687 }
 0x167   : > { %v1332_v7 = vrot.slane %v1234_v9, 1  ;;  %v1892_v22 = vsel %vm472_vm0, %v1574_v43, %v1688_v6 }
 0x168   : > { %v1116_v19 = vsel %vm1063_vm3, %v1113_v4, %v1115_v37  ;;  %v1649_v4 = vunpack.c.l.b16 %v1451_v50 }
 0x169   : > { %v603_v58 = vpop.f32.mrf.mxu0  ;;  %v1333_v10 = vsel %vm1280_vm2, %v1330_v23, %v1332_v7  ;;  %v1415_v30 = vpack.c.bf16 %v1116_v19, %v1116_v19 }
 0x16a   : > { %v604_v28 = vadd.f32 %v3647_v0, %v603_v58  ;;  %v1486_v62 = vpack.c.bf16 %v1333_v10, %v1333_v10 }
 0x16c   : > { %v653_v59 = vmax.f32 %v604_v28, 0.0  ;;  %v1774_v17 = vunpack.c.l.b16 %v1486_v62  ;;  %v728_v62 = vand.u32 15, %v692_v52 }
 0x16e   : > { %v1018_v48 = vsel %vm982_vm4, 0.0, %v653_v59  ;;  %v1452_v60 = vpack.c.bf16 %v653_v59, %v653_v59  ;;  %v1797_v20 = vpack.c.b16 %v1774_v17, %v1773_v63  ;;  %v1334_v51 = vrot.slane %v653_v59, 1 }
 0x16f   : > { %v1117_v15 = vrot.slane %v1018_v48, 7  ;;  %vm984_vm8 = vcmp.eq.s32.totalorder %v728_v62, 15 }
 0x170   : > { %1827 = vrot.lane.b32.xlu1 %v1797_v20, %s3163_s17  ;;  %v1650_v23 = vunpack.c.l.b16 %v1452_v60  ;;  %v1335_v33 = vsel %vm1280_vm2, %v1332_v7, %v1334_v51  ;;  %v693_v60 = vadd.s32 240, %v3284_v16 }
 0x171   : > { %v606_v14 = vpop.f32.mrf.mxu0  ;;  %2125 = vmatmul.bf16.gmra.mxu1 %v1980_v29  ;;  %2267 = vmatmul.bf16.gmra.mxu2 %v1980_v29  ;;  %v1118_v49 = vsel %vm1063_vm3, %v1115_v37, %v1117_v15  ;;  %v3708_v37 = vunpack.c.l.b16 %v1415_v30  ;;  %v1487_v41 = vpack.c.bf16 %v1335_v33, %v1335_v33 }
 0x172   : > { %v607_v18 = vadd.f32 %v3647_v0, %v606_v14  ;;  %v1814_v26 = vpop.permute.xlu1 %1813  ;;  %v1672_v32 = vpack.c.b16 %v1650_v23, %v1649_v4  ;;  %v1416_v9 = vpack.c.bf16 %v1118_v49, %v1118_v49  ;;  %v729_v49 = vand.u32 15, %v693_v60 }
 0x173   : > { %v1941_v13 = vsel %vm1929_vm6, %v1892_v22, %v1814_v26  ;;  %v1775_v6 = vunpack.c.l.b16 %v1487_v41  ;;  %v694_v41 = vadd.s32 248, %v3284_v16 }
 0x174   : > { %v654_v19 = vmax.f32 %v607_v18, 0.0  ;;  %1703 = vrot.lane.b32.xlu0 %v1672_v32, %s3161_s14  ;;  %v1983_v29 = vsel %vm1966_vm7, %v1941_v13, %v1850_v40  ;;  %v3710_v5 = vunpack.c.l.b16 %v1416_v9  ;;  %v1852_v32 = vpop.permute.xlu2 %1851  ;;  %vm1202_vm9 = vcmp.eq.s32.totalorder %v729_v49, 0 }
 0x175   : > { %2416 = vmatmul.bf16.gmra.mxu3 %v1983_v29 }
 0x176   : > { %v1119_v43 = vrot.slane %v654_v19, 7  ;;  %v1236_v58 = vsel %vm1200_vm5, 0.0, %v654_v19  ;;  %v1582_v10 = vpack.c.b16 %v3710_v5, %v3708_v37  ;;  %v1453_v7 = vpack.c.bf16 %v654_v19, %v654_v19  ;;  %v1690_v14 = vpop.permute.xlu0 %1689 }
 0x177   : > { %v1336_v28 = vrot.slane %v1236_v58, 1  ;;  %v1895_v13 = vsel %vm472_vm0, %v1575_v56, %v1690_v14 }
 0x178   : > { %v1120_v50 = vsel %vm1063_vm3, %v1117_v15, %v1119_v43  ;;  %v1651_v15 = vunpack.c.l.b16 %v1453_v7 }
 0x179   : > { %v608_v59 = vpop.f32.mrf.mxu0  ;;  %v1337_v63 = vsel %vm1280_vm2, %v1334_v51, %v1336_v28  ;;  %v1417_v22 = vpack.c.bf16 %v1120_v50, %v1120_v50 }
 0x17a   : > { %v609_v17 = vadd.f32 %v3647_v0, %v608_v59  ;;  %v1488_v48 = vpack.c.bf16 %v1337_v63, %v1337_v63 }
 0x17c   : > { %v655_v20 = vmax.f32 %v609_v17, 0.0  ;;  %v1776_v45 = vunpack.c.l.b16 %v1488_v48  ;;  %v730_v48 = vand.u32 15, %v694_v41 }
 0x17e   : > { %v1020_v4 = vsel %vm984_vm8, 0.0, %v655_v20  ;;  %v1454_v23 = vpack.c.bf16 %v655_v20, %v655_v20  ;;  %v1798_v30 = vpack.c.b16 %v1776_v45, %v1775_v6  ;;  %v1338_v18 = vrot.slane %v655_v20, 1 }
 0x17f   : > { %v1121_v40 = vrot.slane %v1020_v4, 7  ;;  %vm986_vm10 = vcmp.eq.s32.totalorder %v730_v48, 15 }
 0x180   : > { %1829 = vrot.lane.b32.xlu1 %v1798_v30, %s3163_s17  ;;  %v1652_v51 = vunpack.c.l.b16 %v1454_v23  ;;  %v1339_v53 = vsel %vm1280_vm2, %v1336_v28, %v1338_v18  ;;  %v695_v23 = vadd.s32 256, %v3284_v16 }
 0x181   : > { %v611_v26 = vpop.f32.mrf.mxu0  ;;  %2130 = vmatmul.bf16.gmra.mxu1 %v1983_v29  ;;  %2272 = vmatmul.bf16.gmra.mxu2 %v1983_v29  ;;  %v1122_v9 = vsel %vm1063_vm3, %v1119_v43, %v1121_v40  ;;  %v3730_v43 = vunpack.c.l.b16 %v1417_v22  ;;  %v1489_v60 = vpack.c.bf16 %v1339_v53, %v1339_v53 }
 0x182   : > { %v612_v52 = vadd.f32 %v3647_v0, %v611_v26  ;;  %v1816_v19 = vpop.permute.xlu1 %1815  ;;  %v1673_v33 = vpack.c.b16 %v1652_v51, %v1651_v15  ;;  %v1418_v58 = vpack.c.bf16 %v1122_v9, %v1122_v9  ;;  %v731_v9 = vand.u32 15, %v695_v23 }
 0x183   : > { %v1943_v62 = vsel %vm1929_vm6, %v1895_v13, %v1816_v19  ;;  %v1777_v14 = vunpack.c.l.b16 %v1489_v60  ;;  %v696_v60 = vadd.s32 264, %v3284_v16 }
 0x184   : > { %v656_v50 = vmax.f32 %v612_v52, 0.0  ;;  %1705 = vrot.lane.b32.xlu0 %v1673_v33, %s3161_s14  ;;  %v1986_v29 = vsel %vm1966_vm7, %v1943_v62, %v1852_v32  ;;  %v3732_v46 = vunpack.c.l.b16 %v1418_v58  ;;  %v1854_v33 = vpop.permute.xlu2 %1853  ;;  %vm1204_vm11 = vcmp.eq.s32.totalorder %v731_v9, 0 }
 0x185   : > { %2421 = vmatmul.bf16.gmra.mxu3 %v1986_v29 }
 0x186   : > { %v1123_v56 = vrot.slane %v656_v50, 7  ;;  %v1238_v59 = vsel %vm1202_vm9, 0.0, %v656_v50  ;;  %v1583_v63 = vpack.c.b16 %v3732_v46, %v3730_v43  ;;  %v1455_v28 = vpack.c.bf16 %v656_v50, %v656_v50  ;;  %v1692_v26 = vpop.permute.xlu0 %1691 }
 0x187   : > { %v1340_v17 = vrot.slane %v1238_v59, 1  ;;  %v1898_v62 = vsel %vm472_vm0, %v1576_v11, %v1692_v26 }
 0x188   : > { %v1124_v7 = vsel %vm1063_vm3, %v1121_v40, %v1123_v56  ;;  %v1653_v40 = vunpack.c.l.b16 %v1455_v28 }
 0x189   : > { %v613_v20 = vpop.f32.mrf.mxu0  ;;  %v1341_v6 = vsel %vm1280_vm2, %v1338_v18, %v1340_v17  ;;  %v1419_v13 = vpack.c.bf16 %v1124_v7, %v1124_v7 }
 0x18a   : > { %v614_v45 = vadd.f32 %v3647_v0, %v613_v20  ;;  %v1490_v4 = vpack.c.bf16 %v1341_v6, %v1341_v6 }
 0x18c   : > { %v657_v30 = vmax.f32 %v614_v45, 0.0  ;;  %v1778_v49 = vunpack.c.l.b16 %v1490_v4  ;;  %v732_v4 = vand.u32 15, %v696_v60 }
 0x18e   : > { %v1022_v15 = vsel %vm986_vm10, 0.0, %v657_v30  ;;  %v1456_v51 = vpack.c.bf16 %v657_v30, %v657_v30  ;;  %v1799_v22 = vpack.c.b16 %v1778_v49, %v1777_v14  ;;  %v1342_v52 = vrot.slane %v657_v30, 1 }
 0x18f   : > { %v1125_v32 = vrot.slane %v1022_v15, 7  ;;  %vm988_vm12 = vcmp.eq.s32.totalorder %v732_v4, 15 }
 0x190   : > { %1831 = vrot.lane.b32.xlu1 %v1799_v22, %s3163_s17  ;;  %v1654_v18 = vunpack.c.l.b16 %v1456_v51  ;;  %v1343_v2 = vsel %vm1280_vm2, %v1340_v17, %v1342_v52 }
 0x191   : > { %v616_v19 = vpop.f32.mrf.mxu0  ;;  %2135 = vmatmul.bf16.gmra.mxu1 %v1986_v29  ;;  %2277 = vmatmul.bf16.gmra.mxu2 %v1986_v29  ;;  %v1126_v58 = vsel %vm1063_vm3, %v1123_v56, %v1125_v32  ;;  %v3752_v56 = vunpack.c.l.b16 %v1419_v13  ;;  %v1491_v16 = vpack.c.bf16 %v1343_v2, %v1343_v2 }
 0x192   : > { %v617_v41 = vadd.f32 %v3647_v0, %v616_v19  ;;  %v1818_v50 = vpop.permute.xlu1 %1817  ;;  %v1674_v53 = vpack.c.b16 %v1654_v18, %v1653_v40  ;;  %v1420_v59 = vpack.c.bf16 %v1126_v58, %v1126_v58 }
 0x193   : > { %v1945_v48 = vsel %vm1929_vm6, %v1898_v62, %v1818_v50  ;;  %v1779_v17 = vunpack.c.l.b16 %v1491_v16  ;;  %v1856_v62 = vpop.permute.xlu2 %1855 }
 0x194   : > { %v658_v7 = vmax.f32 %v617_v41, 0.0  ;;  %1707 = vrot.lane.b32.xlu0 %v1674_v53, %s3161_s14  ;;  %v1989_v29 = vsel %vm1966_vm7, %v1945_v48, %v1854_v33  ;;  %v3754_v1 = vunpack.c.l.b16 %v1420_v59  ;;  %v1388_v53 = vsel %vm1280_vm2, %v3296_v25, 0.0 }
 0x195   : > { %2426 = vmatmul.bf16.gmra.mxu3 %v1989_v29  ;;  %v1496_v4 = vpack.c.bf16 %v1388_v53, %v1388_v53 }
 0x196   : > { %v1127_v11 = vrot.slane %v658_v7, 7  ;;  %v1240_v20 = vsel %vm1204_vm11, 0.0, %v658_v7  ;;  %v1584_v6 = vpack.c.b16 %v3754_v1, %v3752_v56  ;;  %v1457_v15 = vpack.c.bf16 %v658_v7, %v658_v7  ;;  %v1694_v13 = vpop.permute.xlu0 %1693 }
 0x197   : > { %v1344_v45 = vrot.slane %v1240_v20, 1  ;;  %v1901_v48 = vsel %vm472_vm0, %v1577_v57, %v1694_v13  ;;  %v2981_v57 = vld [vmem:[%s3229_s8 + $0x8] sm:$0xff] }
 0x198   : > { %v1128_v23 = vsel %vm1063_vm3, %v1125_v32, %v1127_v11  ;;  %v1655_v33 = vunpack.c.l.b16 %v1457_v15  ;;  %1873 = vrot.lane.b32.xlu2 %v2981_v57, %s3159_s13  ;;  %2830 = vmatmul.msk.bf16.gmra.mxu0 %vm472_vm0, %v2981_v57 }
 0x199   : > { %v618_v28 = vpop.f32.mrf.mxu0  ;;  %v1345_v30 = vsel %vm1280_vm2, %v1342_v52, %v1344_v45  ;;  %v1421_v58 = vpack.c.bf16 %v1128_v23, %v1128_v23  ;;  %v1784_v23 = vunpack.c.l.b16 %v1496_v4 }
 0x19a   : > { %v619_v14 = vadd.f32 %v3647_v0, %v618_v28  ;;  %v1492_v49 = vpack.c.bf16 %v1345_v30, %v1345_v30 }
 0x19b   : > { %v3779_v16 = vunpack.c.l.b16 %v1421_v58  ;;  %v1802_v28 = vpack.c.b16 %v1784_v23, %v3311_v38 }
 0x19c   : > { %v659_v51 = vmax.f32 %v619_v14, 0.0  ;;  %v1780_v22 = vunpack.c.l.b16 %v1492_v49  ;;  %v1858_v14 = vpop.permute.xlu2 %1857 }
 0x19e   : > { %v1024_v26 = vsel %vm988_vm12, 0.0, %v659_v51  ;;  %v1346_v9 = vrot.slane %v659_v51, 1  ;;  %v1458_v40 = vpack.c.bf16 %v659_v51, %v659_v51  ;;  %v1800_v18 = vpack.c.b16 %v1780_v22, %v1779_v17 }
 0x19f   : > { %v3762_v19 = vrot.slane %v1024_v26, 7 }
 0x1a0   : > { %1833 = vrot.lane.b32.xlu1 %v1800_v18, %s3163_s17  ;;  %v1656_v32 = vunpack.c.l.b16 %v1458_v40  ;;  %v1347_v52 = vsel %vm1280_vm2, %v1344_v45, %v1346_v9  ;;  %v1349_v0 = vsel %vm1280_vm2, %v1346_v9, %v3296_v25 }
 0x1a1   : > { %2140 = vmatmul.bf16.gmra.mxu1 %v1989_v29  ;;  %2282 = vmatmul.bf16.gmra.mxu2 %v1989_v29  ;;  %v1493_v41 = vpack.c.bf16 %v1347_v52, %v1347_v52  ;;  %v1494_v50 = vpack.c.bf16 %v1349_v0, %v1349_v0  ;;  %v1130_v59 = vsel %vm1063_vm3, %v1127_v11, %v3762_v19  ;;  %v3808_v0 = vld [vmem:[%s3922_s5] ss:$0 sm:$0xff] }
 0x1a2   : > { %v1820_v60 = vpop.permute.xlu1 %1819  ;;  %v1675_v7 = vpack.c.b16 %v1656_v32, %v1655_v33  ;;  %v1422_v2 = vpack.c.bf16 %v1130_v59, %v1130_v59 }
 0x1a3   : > { %v1947_v29 = vsel %vm1929_vm6, %v1901_v48, %v1820_v60  ;;  %v1781_v20 = vunpack.c.l.b16 %v1493_v41  ;;  %v1782_v45 = vunpack.c.l.b16 %v1494_v50 }
 0x1a4   : > { %1709 = vrot.lane.b32.xlu0 %v1675_v7, %s3161_s14  ;;  %v1992_v25 = vsel %vm1966_vm7, %v1947_v29, %v1856_v62  ;;  %v3781_v11 = vunpack.c.l.b16 %v1422_v2  ;;  %v1860_v40 = vpop.permute.xlu2 %1859 }
 0x1a5   : > { %2431 = vmatmul.bf16.gmra.mxu3 %v1992_v25  ;;  %v1801_v35 = vpack.c.b16 %v1782_v45, %v1781_v20 }
 0x1a6   : > { %v1585_v54 = vpack.c.b16 %v3781_v11, %v3779_v16  ;;  %v1696_v30 = vpop.permute.xlu0 %1695 }
 0x1a7   : > { %v1904_v49 = vsel %vm472_vm0, %v1578_v55, %v1696_v30 }
 0x1a8   : > { %1835 = vrot.lane.b32.xlu1 %v1801_v35, %s3163_s17  ;;  %v2248_v15 = vpop.f32.mrf.mxu2 }
 0x1ac   : > { %1711 = vrot.lane.b32.xlu0 %v3275_v12, %s3161_s14  ;;  %v1862_v48 = vpop.permute.xlu2 %1861 }
 0x1b0   : > { %1837 = vrot.lane.b32.xlu1 %v1802_v28, %s3163_s17  ;;  %v2250_v12 = vpop.f32.mrf.mxu2 }
 0x1b1   : > { %2145 = vmatmul.bf16.gmra.mxu1 %v1992_v25  ;;  %2287 = vmatmul.bf16.gmra.mxu2 %v1992_v25 }
 0x1b2   : > { %v1822_v51 = vpop.permute.xlu1 %1821 }
 0x1b3   : > { %v1949_v17 = vsel %vm1929_vm6, %v1904_v49, %v1822_v51 }
 0x1b4   : > { %v1995_v22 = vsel %vm1966_vm7, %v1949_v17, %v1858_v14  ;;  %v1864_v39 = vpop.permute.xlu2 %1863 }
 0x1b5   : > { %2436 = vmatmul.bf16.gmra.mxu3 %v1995_v22 }
 0x1b6   : > { %v1698_v9 = vpop.permute.xlu0 %1697 }
 0x1b7   : > { %v1907_v61 = vsel %vm472_vm0, %v1579_v47, %v1698_v9 }
 0x1bd   : > { %v2402_v38 = vpop.f32.mrf.mxu3 }
 0x1be   : > { %v2111_v26 = vpop.f32.mrf.mxu1 }
 0x1bf   : > { %v2249_v55 = vadd.f32 %v2248_v15, %v2111_v26 }
 0x1c1   : > { %2150 = vmatmul.bf16.gmra.mxu1 %v1995_v22  ;;  %2292 = vmatmul.bf16.gmra.mxu2 %v1995_v22  ;;  %v2482_v52 = vadd.f32 %v2402_v38, %v2249_v55 }
 0x1c2   : > { %v1824_v36 = vpop.permute.xlu1 %1823 }
 0x1c3   : > { %v1951_v18 = vsel %vm1929_vm6, %v1907_v61, %v1824_v36  ;;  %v2518_v47 = vadd.f32 %v3808_v0, %v2482_v52 }
 0x1c4   : > { %v2253_v13 = vpop.f32.mrf.mxu2  ;;  %v1998_v33 = vsel %vm1966_vm7, %v1951_v18, %v1860_v40 }
 0x1c5   : > { %2441 = vmatmul.bf16.gmra.mxu3 %v1998_v33  ;;  %v2404_v8 = vpop.f32.mrf.mxu3 }
 0x1c6   : > { %v2113_v32 = vpop.f32.mrf.mxu1  ;;  %v1700_v59 = vpop.permute.xlu0 %1699 }
 0x1c7   : > { %v2251_v58 = vadd.f32 %v2250_v12, %v2113_v32  ;;  %v1910_v60 = vsel %vm472_vm0, %v1580_v3, %v1700_v59 }
 0x1c9   : > { %v2483_v42 = vadd.f32 %v2404_v8, %v2251_v58 }
 0x1cb   : > { %v2519_v62 = vadd.f32 %v3808_v0, %v2483_v42 }
 0x1cc   : > { %v2255_v41 = vpop.f32.mrf.mxu2 }
 0x1cd   : > { %v3011_v50 = vpack.c.bf16 %v2519_v62, %v2518_v47 }
 0x1ce   : > { %v2116_v53 = vpop.f32.mrf.mxu1 }
 0x1cf   : > { %3012 = vst [vmem:[%s3817_s29] sm:$0xff] %v3011_v50   ;;  %v2254_v35 = vadd.f32 %v2253_v13, %v2116_v53  ;;  %v1866_v13 = vpop.permute.xlu2 %1865 }
 0x1d1   : > { %2155 = vmatmul.bf16.gmra.mxu1 %v1998_v33  ;;  %2297 = vmatmul.bf16.gmra.mxu2 %v1998_v33 }
 0x1d2   : > { %v1826_v7 = vpop.permute.xlu1 %1825 }
 0x1d3   : > { %v1953_v2 = vsel %vm1929_vm6, %v1910_v60, %v1826_v7 }
 0x1d4   : > { %v2258_v29 = vpop.f32.mrf.mxu2  ;;  %v2001_v20 = vsel %vm1966_vm7, %v1953_v2, %v1862_v48 }
 0x1d5   : > { %2446 = vmatmul.bf16.gmra.mxu3 %v2001_v20 }
 0x1d6   : > { %v2118_v45 = vpop.f32.mrf.mxu1  ;;  %v1702_v23 = vpop.permute.xlu0 %1701 }
 0x1d7   : > { %v2256_v28 = vadd.f32 %v2255_v41, %v2118_v45  ;;  %v1913_v3 = vsel %vm472_vm0, %v1581_v27, %v1702_v23  ;;  %v1868_v2 = vpop.permute.xlu2 %1867 }
 0x1d8   : > { %v2407_v25 = vpop.f32.mrf.mxu3 }
 0x1d9   : > { %v2484_v30 = vadd.f32 %v2407_v25, %v2254_v35 }
 0x1db   : > { %v2520_v15 = vadd.f32 %v3808_v0, %v2484_v30 }
 0x1dc   : > { %v2260_v4 = vpop.f32.mrf.mxu2 }
 0x1de   : > { %v2121_v57 = vpop.f32.mrf.mxu1 }
 0x1df   : > { %v2259_v61 = vadd.f32 %v2258_v29, %v2121_v57 }
 0x1e0   : > { %v2409_v14 = vpop.f32.mrf.mxu3 }
 0x1e1   : > { %v2485_v21 = vadd.f32 %v2409_v14, %v2256_v28  ;;  %2160 = vmatmul.bf16.gmra.mxu1 %v2001_v20  ;;  %2302 = vmatmul.bf16.gmra.mxu2 %v2001_v20 }
 0x1e2   : > { %v1828_v49 = vpop.permute.xlu1 %1827 }
 0x1e3   : > { %v2521_v51 = vadd.f32 %v3808_v0, %v2485_v21  ;;  %v1955_v17 = vsel %vm1929_vm6, %v1913_v3, %v1828_v49 }
 0x1e4   : > { %v2263_v22 = vpop.f32.mrf.mxu2  ;;  %v2004_v12 = vsel %vm1966_vm7, %v1955_v17, %v1864_v39 }
 0x1e5   : > { %v3016_v38 = vpack.c.bf16 %v2521_v51, %v2520_v15  ;;  %2451 = vmatmul.bf16.gmra.mxu3 %v2004_v12  ;;  %v1870_v15 = vpop.permute.xlu2 %1869 }
 0x1e6   : > { %v2123_v26 = vpop.f32.mrf.mxu1  ;;  %v1704_v31 = vpop.permute.xlu0 %1703 }
 0x1e7   : > { %3088 = vst [vmem:[%s3817_s29 + $0x8] sm:$0xff] %v3016_v38   ;;  %v2261_v27 = vadd.f32 %v2260_v4, %v2123_v26  ;;  %v1916_v33 = vsel %vm472_vm0, %v1582_v10, %v1704_v31 }
 0x1e8   : > { %v2412_v9 = vpop.f32.mrf.mxu3 }
 0x1e9   : > { %v2486_v36 = vadd.f32 %v2412_v9, %v2259_v61 }
 0x1eb   : > { %v2522_v52 = vadd.f32 %v3808_v0, %v2486_v36 }
 0x1ec   : > { %v2265_v40 = vpop.f32.mrf.mxu2 }
 0x1ee   : > { %v2126_v44 = vpop.f32.mrf.mxu1 }
 0x1ef   : > { %v2264_v59 = vadd.f32 %v2263_v22, %v2126_v44 }
 0x1f0   : > { %v2414_v55 = vpop.f32.mrf.mxu3 }
 0x1f1   : > { %v2487_v18 = vadd.f32 %v2414_v55, %v2261_v27  ;;  %2165 = vmatmul.bf16.gmra.mxu1 %v2004_v12  ;;  %2307 = vmatmul.bf16.gmra.mxu2 %v2004_v12 }
 0x1f2   : > { %v1830_v32 = vpop.permute.xlu1 %1829 }
 0x1f3   : > { %v2523_v58 = vadd.f32 %v3808_v0, %v2487_v18  ;;  %v1957_v8 = vsel %vm1929_vm6, %v1916_v33, %v1830_v32  ;;  %v1872_v32 = vpop.permute.xlu2 %1871 }
 0x1f4   : > { %v2268_v42 = vpop.f32.mrf.mxu2  ;;  %v2007_v47 = vsel %vm1966_vm7, %v1957_v8, %v1866_v13  ;;  %v1132_v8 = vsel %vm1063_vm3, %v3762_v19, %v3305_v34 }
 0x1f5   : > { %v3021_v62 = vpack.c.bf16 %v2523_v58, %v2522_v52  ;;  %2456 = vmatmul.bf16.gmra.mxu3 %v2007_v47 }
 0x1f6   : > { %v2128_v41 = vpop.f32.mrf.mxu1  ;;  %v1706_v5 = vpop.permute.xlu0 %1705 }
 0x1f7   : > { %3089 = vst [vmem:[%s3817_s29 + $0x10] sm:$0xff] %v3021_v62   ;;  %v2266_v10 = vadd.f32 %v2265_v40, %v2128_v41  ;;  %v1919_v29 = vsel %vm472_vm0, %v1583_v63, %v1706_v5 }
 0x1f8   : > { %v2417_v50 = vpop.f32.mrf.mxu3 }
 0x1f9   : > { %v2488_v48 = vadd.f32 %v2417_v50, %v2264_v59 }
 0x1fb   : > { %v2524_v45 = vadd.f32 %v3808_v0, %v2488_v48 }
 0x1fc   : > { %v2270_v53 = vpop.f32.mrf.mxu2 }
 0x1fe   : > { %v2131_v37 = vpop.f32.mrf.mxu1 }
 0x1ff   : > { %v2269_v21 = vadd.f32 %v2268_v42, %v2131_v37 }
 0x200   : > { %v2419_v60 = vpop.f32.mrf.mxu3 }
 0x201   : > { %v2489_v7 = vadd.f32 %v2419_v60, %v2266_v10  ;;  %2170 = vmatmul.bf16.gmra.mxu1 %v2007_v47  ;;  %2312 = vmatmul.bf16.gmra.mxu2 %v2007_v47 }
 0x202   : > { %v1832_v20 = vpop.permute.xlu1 %1831 }
 0x203   : > { %v2525_v25 = vadd.f32 %v3808_v0, %v2489_v7  ;;  %v1959_v4 = vsel %vm1929_vm6, %v1919_v29, %v1832_v20 }
 0x204   : > { %v2273_v35 = vpop.f32.mrf.mxu2  ;;  %v2010_v57 = vsel %vm1966_vm7, %v1959_v4, %v1868_v2 }
 0x205   : > { %v3026_v23 = vpack.c.bf16 %v2525_v25, %v2524_v45  ;;  %2461 = vmatmul.bf16.gmra.mxu3 %v2010_v57  ;;  %v1874_v45 = vpop.permute.xlu2 %1873 }
 0x206   : > { %v2133_v28 = vpop.f32.mrf.mxu1  ;;  %v1708_v46 = vpop.permute.xlu0 %1707 }
 0x207   : > { %3090 = vst [vmem:[%s3817_s29 + $0x18] sm:$0xff] %v3026_v23   ;;  %v2271_v63 = vadd.f32 %v2270_v53, %v2133_v28  ;;  %v1922_v51 = vsel %vm472_vm0, %v1584_v6, %v1708_v46 }
 0x208   : > { %v2422_v30 = vpop.f32.mrf.mxu3 }
 0x209   : > { %v2490_v39 = vadd.f32 %v2422_v30, %v2269_v21 }
 0x20b   : > { %v2526_v22 = vadd.f32 %v3808_v0, %v2490_v39 }
 0x20c   : > { %v2275_v14 = vpop.f32.mrf.mxu2 }
 0x20e   : > { %v2136_v43 = vpop.f32.mrf.mxu1 }
 0x20f   : > { %v2274_v27 = vadd.f32 %v2273_v35, %v2136_v43 }
 0x210   : > { %v2424_v3 = vpop.f32.mrf.mxu3 }
 0x211   : > { %v2491_v49 = vadd.f32 %v2424_v3, %v2271_v63  ;;  %2175 = vmatmul.bf16.gmra.mxu1 %v2010_v57  ;;  %2317 = vmatmul.bf16.gmra.mxu2 %v2010_v57 }
 0x212   : > { %v1834_v17 = vpop.permute.xlu1 %1833 }
 0x213   : > { %v2527_v12 = vadd.f32 %v3808_v0, %v2491_v49  ;;  %v1961_v38 = vsel %vm1929_vm6, %v1922_v51, %v1834_v17 }
 0x214   : > { %v2278_v26 = vpop.f32.mrf.mxu2  ;;  %v2013_v9 = vsel %vm1966_vm7, %v1961_v38, %v1870_v15 }
 0x215   : > { %v3031_v40 = vpack.c.bf16 %v2527_v12, %v2526_v22  ;;  %2466 = vmatmul.bf16.gmra.mxu3 %v2013_v9  ;;  %v621_v41 = vpop.f32.mrf.mxu0 }
 0x216   : > { %v2138_v61 = vpop.f32.mrf.mxu1  ;;  %v1710_v56 = vpop.permute.xlu0 %1709 }
 0x217   : > { %3091 = vst [vmem:[%s3817_s29 + $0x20] sm:$0xff] %v3031_v40   ;;  %v2276_v36 = vadd.f32 %v2275_v14, %v2138_v61  ;;  %v1925_v18 = vsel %vm472_vm0, %v1585_v54, %v1710_v56  ;;  %v1423_v54 = vpack.c.bf16 %v1132_v8, %v1132_v8 }
 0x218   : > { %v2427_v44 = vpop.f32.mrf.mxu3 }
 0x219   : > { %v2492_v55 = vadd.f32 %v2427_v44, %v2274_v27  ;;  %v1567_v53 = vunpack.c.l.b16 %v1423_v54 }
 0x21a   : > { %v1836_v1 = vpop.permute.xlu1 %1835 }
 0x21b   : > { %v1963_v33 = vsel %vm1929_vm6, %v1925_v18, %v1836_v1  ;;  %v2528_v58 = vadd.f32 %v3808_v0, %v2492_v55  ;;  %v1586_v48 = vpack.c.b16 %v3553_v24, %v1567_v53 }
 0x21c   : > { %v2280_v31 = vpop.f32.mrf.mxu2  ;;  %v2016_v16 = vsel %vm1966_vm7, %v1963_v33, %v1872_v32 }
 0x21d   : > { %v623_v19 = vpop.f32.mrf.mxu0 }
 0x21e   : > { %v2141_v6 = vpop.f32.mrf.mxu1  ;;  %v1712_v37 = vpop.permute.xlu0 %1711 }
 0x21f   : > { %v2279_v5 = vadd.f32 %v2278_v26, %v2141_v6  ;;  %v1928_v2 = vsel %vm472_vm0, %v1586_v48, %v1712_v37 }
 0x220   : > { %v2429_v13 = vpop.f32.mrf.mxu3 }
 0x221   : > { %v2493_v52 = vadd.f32 %v2429_v13, %v2276_v36  ;;  %2180 = vmatmul.bf16.gmra.mxu1 %v2013_v9  ;;  %2322 = vmatmul.bf16.gmra.mxu2 %v2013_v9 }
 0x222   : > { %v1838_v10 = vpop.permute.xlu1 %1837 }
 0x223   : > { %v2529_v42 = vadd.f32 %v3808_v0, %v2493_v52  ;;  %v1965_v20 = vsel %vm1929_vm6, %v1928_v2, %v1838_v10 }
 0x224   : > { %v2283_v47 = vpop.f32.mrf.mxu2  ;;  %v2019_v24 = vsel %vm1966_vm7, %v1965_v20, %v1874_v45 }
 0x225   : > { %v3036_v11 = vpack.c.bf16 %v2529_v42, %v2528_v58  ;;  %2471 = vmatmul.bf16.gmra.mxu3 %v2016_v16 }
 0x226   : > { %v2143_v62 = vpop.f32.mrf.mxu1 }
 0x227   : > { %3092 = vst [vmem:[%s3817_s29 + $0x28] sm:$0xff] %v3036_v11   ;;  %v2281_v60 = vadd.f32 %v2280_v31, %v2143_v62 }
 0x228   : > { %v2432_v50 = vpop.f32.mrf.mxu3 }
 0x229   : > { %v2494_v7 = vadd.f32 %v2432_v50, %v2279_v5 }
 0x22b   : > { %v2530_v4 = vadd.f32 %v3808_v0, %v2494_v7 }
 0x22c   : > { %v2285_v59 = vpop.f32.mrf.mxu2 }
 0x22e   : > { %v2146_v34 = vpop.f32.mrf.mxu1 }
 0x22f   : > { %v2284_v21 = vadd.f32 %v2283_v47, %v2146_v34 }
 0x230   : > { %v2434_v29 = vpop.f32.mrf.mxu3 }
 0x231   : > { %v2495_v25 = vadd.f32 %v2434_v29, %v2281_v60  ;;  %2185 = vmatmul.bf16.gmra.mxu1 %v2016_v16 }
 0x233   : > { %v2531_v35 = vadd.f32 %v3808_v0, %v2495_v25 }
 0x234   : > { %v2288_v57 = vpop.f32.mrf.mxu2 }
 0x235   : > { %v3041_v23 = vpack.c.bf16 %v2531_v35, %v2530_v4  ;;  %2476 = vmatmul.bf16.gmra.mxu3 %v2019_v24 }
 0x236   : > { %v2148_v28 = vpop.f32.mrf.mxu1 }
 0x237   : > { %3093 = vst [vmem:[%s3817_s29 + $0x30] sm:$0xff] %v3041_v23   ;;  %v2286_v46 = vadd.f32 %v2285_v59, %v2148_v28 }
 0x238   : > { %v2437_v30 = vpop.f32.mrf.mxu3 }
 0x239   : > { %v2496_v63 = vadd.f32 %v2437_v30, %v2284_v21 }
 0x23b   : > { %v2532_v49 = vadd.f32 %v3808_v0, %v2496_v63 }
 0x23c   : > { %v2290_v14 = vpop.f32.mrf.mxu2 }
 0x23e   : > { %v2151_v43 = vpop.f32.mrf.mxu1 }
 0x23f   : > { %v2289_v26 = vadd.f32 %v2288_v57, %v2151_v43 }
 0x240   : > { %v2439_v39 = vpop.f32.mrf.mxu3 }
 0x241   : > { %v2497_v3 = vadd.f32 %v2439_v39, %v2286_v46 }
 0x243   : > { %v2533_v15 = vadd.f32 %v3808_v0, %v2497_v3 }
 0x244   : > { %v2293_v51 = vpop.f32.mrf.mxu2 }
 0x245   : > { %v3046_v17 = vpack.c.bf16 %v2533_v15, %v2532_v49 }
 0x246   : > { %v2153_v22 = vpop.f32.mrf.mxu1 }
 0x247   : > { %3094 = vst [vmem:[%s3817_s29 + $0x38] sm:$0xff] %v3046_v17   ;;  %v2291_v40 = vadd.f32 %v2290_v14, %v2153_v22 }
 0x248   : > { %v2442_v12 = vpop.f32.mrf.mxu3 }
 0x249   : > { %v2498_v61 = vadd.f32 %v2442_v12, %v2289_v26 }
 0x24b   : > { %v2534_v27 = vadd.f32 %v3808_v0, %v2498_v61 }
 0x24c   : > { %v2295_v38 = vpop.f32.mrf.mxu2 }
 0x24e   : > { %v2156_v9 = vpop.f32.mrf.mxu1 }
 0x24f   : > { %v2294_v13 = vadd.f32 %v2293_v51, %v2156_v9 }
 0x250   : > { %v2444_v44 = vpop.f32.mrf.mxu3 }
 0x251   : > { %v2499_v31 = vadd.f32 %v2444_v44, %v2291_v40 }
 0x253   : > { %v2535_v56 = vadd.f32 %v3808_v0, %v2499_v31 }
 0x254   : > { %v2298_v1 = vpop.f32.mrf.mxu2 }
 0x255   : > { %v3051_v6 = vpack.c.bf16 %v2535_v56, %v2534_v27 }
 0x256   : > { %v2158_v36 = vpop.f32.mrf.mxu1 }
 0x257   : > { %3095 = vst [vmem:[%s3817_s29 + $0x40] sm:$0xff] %v3051_v6   ;;  %v2296_v32 = vadd.f32 %v2295_v38, %v2158_v36 }
 0x258   : > { %v2447_v55 = vpop.f32.mrf.mxu3 }
 0x259   : > { %v2500_v52 = vadd.f32 %v2447_v55, %v2294_v13 }
 0x25b   : > { %v2536_v42 = vadd.f32 %v3808_v0, %v2500_v52 }
 0x25c   : > { %v2300_v18 = vpop.f32.mrf.mxu2 }
 0x25e   : > { %v2161_v33 = vpop.f32.mrf.mxu1 }
 0x25f   : > { %v2299_v41 = vadd.f32 %v2298_v1, %v2161_v33 }
 0x260   : > { %v2449_v58 = vpop.f32.mrf.mxu3 }
 0x261   : > { %v2501_v8 = vadd.f32 %v2449_v58, %v2296_v32 }
 0x263   : > { %v2537_v47 = vadd.f32 %v3808_v0, %v2501_v8 }
 0x264   : > { %v2303_v16 = vpop.f32.mrf.mxu2 }
 0x265   : > { %v3056_v11 = vpack.c.bf16 %v2537_v47, %v2536_v42 }
 0x266   : > { %v2163_v54 = vpop.f32.mrf.mxu1 }
 0x267   : > { %3096 = vst [vmem:[%s3817_s29 + $0x48] sm:$0xff] %v3056_v11   ;;  %v2301_v59 = vadd.f32 %v2300_v18, %v2163_v54 }
 0x268   : > { %v2452_v62 = vpop.f32.mrf.mxu3 }
 0x269   : > { %v2502_v37 = vadd.f32 %v2452_v62, %v2299_v41 }
 0x26b   : > { %v2538_v48 = vadd.f32 %v3808_v0, %v2502_v37 }
 0x26c   : > { %v2305_v50 = vpop.f32.mrf.mxu2 }
 0x26e   : > { %v2166_v53 = vpop.f32.mrf.mxu1 }
 0x26f   : > { %v2304_v29 = vadd.f32 %v2303_v16, %v2166_v53 }
 0x270   : > { %v2454_v5 = vpop.f32.mrf.mxu3 }
 0x271   : > { %v2503_v10 = vadd.f32 %v2454_v5, %v2301_v59 }
 0x273   : > { %v2539_v34 = vadd.f32 %v3808_v0, %v2503_v10 }
 0x274   : > { %v2308_v7 = vpop.f32.mrf.mxu2 }
 0x275   : > { %v3061_v19 = vpack.c.bf16 %v2539_v34, %v2538_v48 }
 0x276   : > { %v2168_v60 = vpop.f32.mrf.mxu1 }
 0x277   : > { %3097 = vst [vmem:[%s3817_s29 + $0x50] sm:$0xff] %v3061_v19   ;;  %v2306_v45 = vadd.f32 %v2305_v50, %v2168_v60 }
 0x278   : > { %v2457_v2 = vpop.f32.mrf.mxu3 }
 0x279   : > { %v2504_v25 = vadd.f32 %v2457_v2, %v2304_v29 }
 0x27b   : > { %v2540_v24 = vadd.f32 %v3808_v0, %v2504_v25 }
 0x27c   : > { %v2310_v57 = vpop.f32.mrf.mxu2 }
 0x27e   : > { %v2171_v20 = vpop.f32.mrf.mxu1 }
 0x27f   : > { %v2309_v43 = vadd.f32 %v2308_v7, %v2171_v20 }
 0x280   : > { %v2459_v4 = vpop.f32.mrf.mxu3 }
 0x281   : > { %v2505_v35 = vadd.f32 %v2459_v4, %v2306_v45 }
 0x283   : > { %v2541_v23 = vadd.f32 %v3808_v0, %v2505_v35 }
 0x284   : > { %v2313_v21 = vpop.f32.mrf.mxu2 }
 0x285   : > { %v3066_v28 = vpack.c.bf16 %v2541_v23, %v2540_v24 }
 0x286   : > { %v2173_v30 = vpop.f32.mrf.mxu1 }
 0x287   : > { %3098 = vst [vmem:[%s3817_s29 + $0x58] sm:$0xff] %v3066_v28   ;;  %v2311_v63 = vadd.f32 %v2310_v57, %v2173_v30 }
 0x288   : > { %v2462_v14 = vpop.f32.mrf.mxu3 }
 0x289   : > { %v2506_v39 = vadd.f32 %v2462_v14, %v2309_v43 }
 0x28b   : > { %v2542_v15 = vadd.f32 %v3808_v0, %v2506_v39 }
 0x28c   : > { %v2315_v22 = vpop.f32.mrf.mxu2 }
 0x28e   : > { %v2176_v46 = vpop.f32.mrf.mxu1 }
 0x28f   : > { %v2314_v26 = vadd.f32 %v2313_v21, %v2176_v46 }
 0x290   : > { %v2464_v3 = vpop.f32.mrf.mxu3 }
 0x291   : > { %v2507_v49 = vadd.f32 %v2464_v3, %v2311_v63 }
 0x293   : > { %v2543_v51 = vadd.f32 %v3808_v0, %v2507_v49 }
 0x294   : > { %v2318_v44 = vpop.f32.mrf.mxu2 }
 0x295   : > { %v3071_v17 = vpack.c.bf16 %v2543_v51, %v2542_v15 }
 0x296   : > { %v2178_v12 = vpop.f32.mrf.mxu1 }
 0x297   : > { %3099 = vst [vmem:[%s3817_s29 + $0x60] sm:$0xff] %v3071_v17   ;;  %v2316_v40 = vadd.f32 %v2315_v22, %v2178_v12 }
 0x298   : > { %v2467_v38 = vpop.f32.mrf.mxu3 }
 0x299   : > { %v2508_v61 = vadd.f32 %v2467_v38, %v2314_v26 }
 0x29b   : > { %v2544_v56 = vadd.f32 %v3808_v0, %v2508_v61 }
 0x29c   : > { %v2320_v18 = vpop.f32.mrf.mxu2 }
 0x29e   : > { %v2181_v9 = vpop.f32.mrf.mxu1 }
 0x29f   : > { %v2319_v13 = vadd.f32 %v2318_v44, %v2181_v9 }
 0x2a0   : > { %v2469_v31 = vpop.f32.mrf.mxu3 }
 0x2a1   : > { %v2509_v27 = vadd.f32 %v2469_v31, %v2316_v40 }
 0x2a3   : > { %v2545_v1 = vadd.f32 %v3808_v0, %v2509_v27 }
 0x2a4   : > { %v2323_v16 = vpop.f32.mrf.mxu2 }
 0x2a5   : > { %v3076_v6 = vpack.c.bf16 %v2545_v1, %v2544_v56 }
 0x2a6   : > { %v2183_v36 = vpop.f32.mrf.mxu1 }
 0x2a7   : > { %3100 = vst [vmem:[%s3817_s29 + $0x68] sm:$0xff] %v3076_v6   ;;  %v2321_v33 = vadd.f32 %v2320_v18, %v2183_v36 }
 0x2a8   : > { %v2472_v55 = vpop.f32.mrf.mxu3 }
 0x2a9   : > { %v2510_v32 = vadd.f32 %v2472_v55, %v2319_v13 }
 0x2ab   : > { %v2546_v42 = vadd.f32 %v3808_v0, %v2510_v32 }
 0x2ac   : > { %v2325_v50 = vpop.f32.mrf.mxu2 }
 0x2ae   : > { %v2186_v8 = vpop.f32.mrf.mxu1 }
 0x2af   : > { %v2324_v41 = vadd.f32 %v2323_v16, %v2186_v8 }
 0x2b0   : > { %v2474_v52 = vpop.f32.mrf.mxu3 }
 0x2b1   : > { %v2511_v58 = vadd.f32 %v2474_v52, %v2321_v33 }
 0x2b3   : > { %v2547_v47 = vadd.f32 %v3808_v0, %v2511_v58 }
 0x2b5   : > { %v3081_v11 = vpack.c.bf16 %v2547_v47, %v2546_v42 }
 0x2b6   : > { %v2188_v62 = vpop.f32.mrf.mxu1 }
 0x2b7   : > { %3101 = vst [vmem:[%s3817_s29 + $0x70] sm:$0xff] %v3081_v11   ;;  %v2326_v53 = vadd.f32 %v2325_v50, %v2188_v62 }
 0x2b8   : > { %v2477_v54 = vpop.f32.mrf.mxu3 }
 0x2b9   : > { %v2512_v59 = vadd.f32 %v2477_v54, %v2324_v41 }
 0x2bb   : > { %v2548_v10 = vadd.f32 %v3808_v0, %v2512_v59 }
 0x2c0   : > { %v2479_v37 = vpop.f32.mrf.mxu3 }
 0x2c1   : > { %v2513_v5 = vadd.f32 %v2479_v37, %v2326_v53 }
 0x2c3   : > { %v2549_v48 = vadd.f32 %v3808_v0, %v2513_v5 }
 0x2c5   : > { %v3086_v34 = vpack.c.bf16 %v2549_v48, %v2548_v10 }
 0x2c7   : > { %3102 = vst [vmem:[%s3817_s29 + $0x78] sm:$0xff] %v3086_v34  }
 0x2c8 PF: > { %s16_s23 = sadd.s32 1, %s3157_s23   ;;  %s3926_s21 = smov %s3153_s22 }
 0x2c9   : > { %p13_p5 = scmp.ge.s32.totalorder %s16_s23, 4   ;;  %s3927_s22 = smov %s3929_s24 }
 0x2cb   :  { %15 = sbr.rel (!%p13_p5) target bundleno = 2 (0x2), region = 79 }

</bundles_post_ra>
